<compile_context>
chip_gen: v5e
topology: v5e:2x2
jax: 0.10.0
libtpu: 0.0.40
codegen_flags: <defaults>
</compile_context>

<pallas_src>
import functools
import math

import numpy as np
import jax
import jax.numpy as jnp
from jax.experimental import pallas as pl
from jax.experimental.pallas import tpu as pltpu


# --------------------------------------------------------------------------
# Host-side DFT matrices
# --------------------------------------------------------------------------
def _dft_matrix_c(n):
    """Symmetric complex n x n DFT matrix exp(-2i*pi*k*m/n)."""
    k = np.arange(n)
    return np.exp(-2j * np.pi * np.outer(k, k) / n)


def _dft_1d_parts(n):
    f = _dft_matrix_c(n)
    return f.real.astype(np.float32), f.imag.astype(np.float32)


def _dft_2d_cat(h, w):
    """(H*W, 2*H*W) matrix [Re | Im] of the full 2-D DFT (kron(F_H, F_W)).

    Row-major flattened images x satisfy  fft2(X).flatten() == x @ kron(F_H,F_W)
    (the kron of two symmetric matrices is symmetric)."""
    f2 = np.kron(_dft_matrix_c(h), _dft_matrix_c(w))
    return np.concatenate([f2.real, f2.imag], axis=1).astype(np.float32)


# --------------------------------------------------------------------------
# In-kernel atan2 (torch.angle equivalent)
# --------------------------------------------------------------------------
def _atan2(y, x):
    """Elementwise atan2(y, x) from TPU-friendly ops (abs/mul/add/where + EUP
    reciprocal), Cephes atanf-style range reduction.  x==0 / 0/0 cases are
    fixed up by the final where-chain, so inf/nan in unselected branches is
    harmless for the forward pass."""
    pi = jnp.float32(np.pi)
    t = y * pl.reciprocal(x, approx=True)            # y/x off the VALU (EUP slot)
    at = jnp.abs(t)
    big = at > jnp.float32(2.414213562373095)        # tan(3*pi/8)
    med = at > jnp.float32(0.4142135623730951)       # tan(pi/8)
    inv_at = pl.reciprocal(jnp.maximum(at, jnp.float32(1e-30)), approx=True)
    inv_atp1 = pl.reciprocal(at + jnp.float32(1.0), approx=True)
    tr = jnp.where(big, -inv_at, jnp.where(med, (at - 1.0) * inv_atp1, at))
    off = jnp.where(big, pi * 0.5, jnp.where(med, pi * 0.25, jnp.float32(0.0)))
    z = tr * tr
    p = ((((jnp.float32(8.05374449538e-2) * z - jnp.float32(1.38776856032e-1)) * z
           + jnp.float32(1.99777106478e-1)) * z - jnp.float32(3.33329491539e-1))
         * z * tr + tr)
    atan_abs = off + p
    atan_t = jnp.where(t < 0, -atan_abs, atan_abs)
    return jnp.where(
        x > 0, atan_t,
        jnp.where(
            x < 0,
            jnp.where(y >= 0, atan_t + pi, atan_t - pi),
            jnp.where(y > 0, pi * 0.5,
                      jnp.where(y < 0, -pi * 0.5, jnp.float32(0.0)))))


# --------------------------------------------------------------------------
# Kernels
# --------------------------------------------------------------------------
def _fft_loss_fused_kernel(sr_ref, hr_ref, f2_ref, out_ref, *, HW, w_phase, w_mag):
    """Small-image path: one fused 2-D DFT matmul per input block.

    sr_ref / hr_ref: (1, B, H*W) flattened images; f2_ref: (HW, 2*HW) = [Re|Im].
    """
    f2 = f2_ref[...]
    ys = jnp.dot(sr_ref[0], f2, preferred_element_type=jnp.float32)   # (B, 2*HW)
    yh = jnp.dot(hr_ref[0], f2, preferred_element_type=jnp.float32)
    ys_re, ys_im = ys[:, :HW], ys[:, HW:]
    yh_re, yh_im = yh[:, :HW], yh[:, HW:]

    acc = jnp.float32(0.0)
    if w_mag != 0.0:                                   # trace-time gate
        d = (jnp.sqrt(ys_re * ys_re + ys_im * ys_im)
             - jnp.sqrt(yh_re * yh_re + yh_im * yh_im))
        acc = acc + jnp.float32(w_mag) * jnp.sum(d * d)
    if w_phase != 0.0:
        d = _atan2(ys_im, ys_re) - _atan2(yh_im, yh_re)
        acc = acc + jnp.float32(w_phase) * jnp.sum(d * d)

    out_ref[...] = jnp.broadcast_to(acc, (1, 1, 128))


def _fft_loss_tiled_kernel(sr_ref, hr_ref, fw_ref, fh_ref, out_ref,
                           sre_ref, sim_ref, *, B, H, W, w_phase, w_mag):
    """Large-image path: separable 2-D DFT (two matmul stages) per block.

    sr_ref / hr_ref: (1, B*H, W) row-stacked images.
    fw_ref: (W, 2W) = [Re(F_W) | Im(F_W)]; fh_ref: (3, H, H) = [Re, Im, Re+Im].
    Scratch sre/sim: (H, 2*B*W) lane-packed complex intermediate
    (sr images in lanes [0, B*W), hr images in lanes [B*W, 2*B*W)).
    """
    fw = fw_ref[...]
    # Stage 1 (fused re/im): A = X @ [F_W_re | F_W_im]  ->  (B*H, 2W)
    a_s = jnp.dot(sr_ref[0], fw, preferred_element_type=jnp.float32)
    a_h = jnp.dot(hr_ref[0], fw, preferred_element_type=jnp.float32)

    # Repack into lane-packed slabs (static slices only; B <= 16 unroll).
    for b in range(B):
        rows = slice(b * H, (b + 1) * H)
        sre_ref[:, b * W:(b + 1) * W] = a_s[rows, 0:W]
        sim_ref[:, b * W:(b + 1) * W] = a_s[rows, W:2 * W]
        sre_ref[:, (B + b) * W:(B + b + 1) * W] = a_h[rows, 0:W]
        sim_ref[:, (B + b) * W:(B + b + 1) * W] = a_h[rows, W:2 * W]

    s_re = sre_ref[...]
    s_im = sim_ref[...]

    # Stage 2: Y = F_H @ A on the lane-dense slab, 3-mult complex matmul.
    t1 = jnp.dot(fh_ref[0], s_re, preferred_element_type=jnp.float32)
    t2 = jnp.dot(fh_ref[1], s_im, preferred_element_type=jnp.float32)
    t3 = jnp.dot(fh_ref[2], s_re + s_im, preferred_element_type=jnp.float32)
    y_re = t1 - t2
    y_im = t3 - t1 - t2

    BW = B * W
    acc = jnp.float32(0.0)
    if w_mag != 0.0:
        mag = jnp.sqrt(y_re * y_re + y_im * y_im)
        d = mag[:, :BW] - mag[:, BW:]
        acc = acc + jnp.float32(w_mag) * jnp.sum(d * d)
    if w_phase != 0.0:
        ang = _atan2(y_im, y_re)
        d = ang[:, :BW] - ang[:, BW:]
        acc = acc + jnp.float32(w_phase) * jnp.sum(d * d)

    out_ref[...] = jnp.broadcast_to(acc, (1, 1, 128))


# --------------------------------------------------------------------------
# Planning helpers
# --------------------------------------------------------------------------
def _vmem_capacity_bytes():
    try:
        cap = getattr(pltpu.get_tpu_info(), "vmem_capacity_bytes", None)
        if cap:
            return int(cap)
    except Exception:
        pass
    return 64 * 1024 * 1024          # conservative default (v7x-sized)


def _plan_batch(nc, per_pair_bytes, fixed_bytes, budget_bytes,
                unroll_cap=None, lane_mult=1):
    """Choose images-per-step B and grid length G = ceil(nc / B)."""
    avail = max(budget_bytes - fixed_bytes, per_pair_bytes)
    b_max = max(1, int(avail // per_pair_bytes))
    if unroll_cap is not None:
        b_max = min(b_max, unroll_cap)
    if nc >= 2:
        b_max = min(b_max, -(-nc // 2))   # G >= 2: one step per TC on v7x
    b_max = max(1, min(b_max, nc))
    # Prefer (within 2x of b_max) a B that divides nc -> no zero-pad HBM copy;
    # among those prefer B*W % 128 == 0 (lane-aligned slab splits).
    divisors = [b for b in range(b_max, max(b_max // 2, 1) - 1, -1) if nc % b == 0]
    aligned = [b for b in divisors if b % lane_mult == 0]
    if aligned:
        b = aligned[0]
    elif divisors:
        b = divisors[0]
    else:
        b = b_max
    g = -(-nc // b)
    return g, b


def _pad_groups(x2, pad, H, W):
    if pad:
        # Zero image-pairs contribute exactly 0 to both loss terms.
        x2 = jnp.concatenate([x2, jnp.zeros((pad, H, W), jnp.float32)], axis=0)
    return x2


# --------------------------------------------------------------------------
# pallas_call wrappers
# --------------------------------------------------------------------------
_SMALL_IMAGE_MAX_ELEMS = 512          # fused 2-D DFT path threshold (H*W)


def _run_fused(sr2, hr2, nc, H, W, w_phase, w_mag, budget, vmem_limit):
    HW = H * W
    f2cat = _dft_2d_cat(H, W)                              # (HW, 2*HW) f32
    fixed = 2 * f2cat.size * 4                             # double-buffered matrix
    per_pair = 128 * HW                                    # conservative live f32/pair
    G, B = _plan_batch(nc, per_pair, fixed, budget)
    pad = G * B - nc
    sr_g = _pad_groups(sr2, pad, H, W).reshape(G, B, HW)
    hr_g = _pad_groups(hr2, pad, H, W).reshape(G, B, HW)

    kernel = functools.partial(_fft_loss_fused_kernel, HW=HW,
                               w_phase=w_phase, w_mag=w_mag)
    return pl.pallas_call(
        kernel,
        out_shape=jax.ShapeDtypeStruct((G, 1, 128), jnp.float32),
        grid_spec=pltpu.PrefetchScalarGridSpec(
            num_scalar_prefetch=0,
            grid=(G,),
            in_specs=[
                pl.BlockSpec((1, B, HW), lambda g: (g, 0, 0)),     # sr group g
                pl.BlockSpec((1, B, HW), lambda g: (g, 0, 0)),     # hr group g
                pl.BlockSpec((HW, 2 * HW), lambda g: (0, 0)),      # [Re|Im] 2-D DFT
            ],
            out_specs=pl.BlockSpec((1, 1, 128), lambda g: (g, 0, 0)),
        ),
        compiler_params=pltpu.CompilerParams(
            dimension_semantics=("parallel",),
            vmem_limit_bytes=vmem_limit),
    )(sr_g, hr_g, jnp.asarray(f2cat))


def _run_tiled(sr2, hr2, nc, H, W, w_phase, w_mag, budget, vmem_limit):
    fw_re, fw_im = _dft_1d_parts(W)
    fh_re, fh_im = _dft_1d_parts(H)
    fw_cat = np.concatenate([fw_re, fw_im], axis=1)                 # (W, 2W)
    fh_pack = np.stack([fh_re, fh_im, fh_re + fh_im], axis=0)       # (3, H, H)

    fixed = (2 * fw_cat.size + 2 * fh_pack.size) * 4
    per_pair = 160 * H * W                                          # conservative
    lane_mult = 128 // math.gcd(W, 128)
    G, B = _plan_batch(nc, per_pair, fixed, budget,
                       unroll_cap=16, lane_mult=lane_mult)
    pad = G * B - nc
    sr_g = _pad_groups(sr2, pad, H, W).reshape(G, B * H, W)
    hr_g = _pad_groups(hr2, pad, H, W).reshape(G, B * H, W)

    kernel = functools.partial(_fft_loss_tiled_kernel, B=B, H=H, W=W,
                               w_phase=w_phase, w_mag=w_mag)
    return pl.pallas_call(
        kernel,
        out_shape=jax.ShapeDtypeStruct((G, 1, 128), jnp.float32),
        grid_spec=pltpu.PrefetchScalarGridSpec(
            num_scalar_prefetch=0,
            grid=(G,),
            in_specs=[
                pl.BlockSpec((1, B * H, W), lambda g: (g, 0, 0)),   # sr group g
                pl.BlockSpec((1, B * H, W), lambda g: (g, 0, 0)),   # hr group g
                pl.BlockSpec((W, 2 * W), lambda g: (0, 0)),         # [Re|Im] F_W
                pl.BlockSpec((3, H, H), lambda g: (0, 0, 0)),       # F_H re/im/sum
            ],
            out_specs=pl.BlockSpec((1, 1, 128), lambda g: (g, 0, 0)),
            scratch_shapes=[
                pltpu.VMEM((H, 2 * B * W), jnp.float32),            # slab Re
                pltpu.VMEM((H, 2 * B * W), jnp.float32),            # slab Im
            ],
        ),
        compiler_params=pltpu.CompilerParams(
            dimension_semantics=("parallel",),
            vmem_limit_bytes=vmem_limit),
    )(sr_g, hr_g, jnp.asarray(fw_cat), jnp.asarray(fh_pack))


# --------------------------------------------------------------------------
# Public entry point
# --------------------------------------------------------------------------
def fft_loss(sr, hr, loss_type="FFT"):
    """Pallas implementation of FFT.forward(sr, hr) (forward pass only)."""
    # Reproduce the original gating exactly: `str.find(sub)` is -1 (truthy) when
    # absent and 0 (falsy) only when loss_type *starts with* that substring.
    w_phase = 1.0 if bool(loss_type.find('PHASE')) else 0.0
    w_mag = 1.0 if bool(loss_type.find('MAGNITUDE')) else 0.0

    N, C, H, W = sr.shape
    count = N * C * H * W
    if w_phase == 0.0 and w_mag == 0.0:
        return jnp.float32(0.0)

    nc = N * C
    sr2 = sr.reshape(nc, H, W).astype(jnp.float32)
    hr2 = hr.reshape(nc, H, W).astype(jnp.float32)   # hr.detach(): forward-only here

    cap = _vmem_capacity_bytes()
    budget = max(16 * 1024 * 1024, min(int(cap * 0.4), 48 * 1024 * 1024))
    vmem_limit = max(32 * 1024 * 1024, min(int(cap * 3 // 4), 100 * 1024 * 1024))

    if H * W <= _SMALL_IMAGE_MAX_ELEMS:
        partials = _run_fused(sr2, hr2, nc, H, W, w_phase, w_mag, budget, vmem_limit)
    else:
        partials = _run_tiled(sr2, hr2, nc, H, W, w_phase, w_mag, budget, vmem_limit)

    total = jnp.sum(partials[:, 0, 0])
    # loss = 0.5*mean(d_angle^2) + 0.5*mean(d_mag^2); means over N*C*H*W elements.
    return jnp.float32(0.5) * total / jnp.float32(count)


if __name__ == "__main__":
    key = jax.random.PRNGKey(0)
    k1, k2 = jax.random.split(key)
    N, C, H, W = 2, 4, 16, 16
    sr = jax.random.normal(k1, (N, C, H, W), dtype=jnp.float32)
    hr = jax.random.normal(k2, (N, C, H, W), dtype=jnp.float32)

    loss = fft_loss(sr, hr, loss_type="FFT")
    jax.block_until_ready(loss)
    print("KERNEL_OK")
</pallas_src>

<mosaic_0001>
module attributes {stable_mosaic.version = 11 : i64} {
  func.func @_fft_loss_fused_kernel(%arg0: i32, %arg1: memref<1x4x256xf32, #tpu.memory_space<vmem>>, %arg2: memref<1x4x256xf32, #tpu.memory_space<vmem>>, %arg3: memref<256x512xf32, #tpu.memory_space<vmem>>, %arg4: memref<1x1x128xf32, #tpu.memory_space<vmem>>) attributes {dimension_semantics = [#tpu.dimension_semantics<parallel>], iteration_bounds = array<i64: 2>, scalar_prefetch = 0 : i64, scratch_operands = 0 : i64, tpu.core_type = #tpu.core_type<tc>, window_params = [{transform_indices = @transform_0, window_bounds = array<i64: 1, 4, 256>}, {transform_indices = @transform_1, window_bounds = array<i64: 1, 4, 256>}, {pipeline_mode = #tpu.pipeline_mode<synchronous>, transform_indices = @transform_2, window_bounds = array<i64: 256, 512>}, {transform_indices = @transform_3, window_bounds = array<i64: 1, 1, 128>}]} {
    %c0 = arith.constant 0 : index
    %c0_0 = arith.constant 0 : index
    %0 = vector.load %arg3[%c0, %c0_0] : memref<256x512xf32, #tpu.memory_space<vmem>>, vector<256x512xf32>
    %c0_1 = arith.constant 0 : index
    %c0_2 = arith.constant 0 : index
    %c0_3 = arith.constant 0 : index
    %1 = vector.load %arg1[%c0_1, %c0_2, %c0_3] : memref<1x4x256xf32, #tpu.memory_space<vmem>>, vector<1x4x256xf32>
    %2 = vector.shape_cast %1 : vector<1x4x256xf32> to vector<4x256xf32>
    %cst = arith.constant dense<0.000000e+00> : vector<4x512xf32>
    %3 = tpu.matmul %2, %0, %cst {dimension_numbers = #tpu.dot_dimension_numbers<[1], [0], [0], [1], [0, 0, 1, 1], [], []>} : vector<4x256xf32>, vector<256x512xf32>, vector<4x512xf32> -> vector<4x512xf32>
    %c0_4 = arith.constant 0 : index
    %c0_5 = arith.constant 0 : index
    %c0_6 = arith.constant 0 : index
    %4 = vector.load %arg2[%c0_4, %c0_5, %c0_6] : memref<1x4x256xf32, #tpu.memory_space<vmem>>, vector<1x4x256xf32>
    %5 = vector.shape_cast %4 : vector<1x4x256xf32> to vector<4x256xf32>
    %cst_7 = arith.constant dense<0.000000e+00> : vector<4x512xf32>
    %6 = tpu.matmul %5, %0, %cst_7 {dimension_numbers = #tpu.dot_dimension_numbers<[1], [0], [0], [1], [0, 0, 1, 1], [], []>} : vector<4x256xf32>, vector<256x512xf32>, vector<4x512xf32> -> vector<4x512xf32>
    %7 = vector.extract_strided_slice %3 {offsets = [0, 0], sizes = [4, 256], strides = [1, 1]} : vector<4x512xf32> to vector<4x256xf32>
    %8 = vector.extract_strided_slice %3 {offsets = [0, 256], sizes = [4, 256], strides = [1, 1]} : vector<4x512xf32> to vector<4x256xf32>
    %9 = vector.extract_strided_slice %6 {offsets = [0, 0], sizes = [4, 256], strides = [1, 1]} : vector<4x512xf32> to vector<4x256xf32>
    %10 = vector.extract_strided_slice %6 {offsets = [0, 256], sizes = [4, 256], strides = [1, 1]} : vector<4x512xf32> to vector<4x256xf32>
    %11 = arith.mulf %7, %7 : vector<4x256xf32>
    %12 = arith.mulf %8, %8 : vector<4x256xf32>
    %13 = arith.addf %11, %12 : vector<4x256xf32>
    %14 = math.sqrt %13 : vector<4x256xf32>
    %15 = arith.mulf %9, %9 : vector<4x256xf32>
    %16 = arith.mulf %10, %10 : vector<4x256xf32>
    %17 = arith.addf %15, %16 : vector<4x256xf32>
    %18 = math.sqrt %17 : vector<4x256xf32>
    %19 = arith.subf %14, %18 : vector<4x256xf32>
    %20 = arith.mulf %19, %19 : vector<4x256xf32>
    %21 = vector.shape_cast %20 : vector<4x256xf32> to vector<1x4x256xf32>
    %cst_8 = arith.constant dense<0.000000e+00> : vector<1xf32>
    %22 = vector.multi_reduction <add>, %21, %cst_8 [1, 2] : vector<1x4x256xf32> to vector<1xf32>
    %23 = vector.shape_cast %22 : vector<1xf32> to vector<1x1x1xf32>
    %24 = vector.extract %23[0, 0, 0] : f32 from vector<1x1x1xf32>
    %cst_9 = arith.constant 1.000000e+00 : f32
    %25 = arith.mulf %cst_9, %24 : f32
    %cst_10 = arith.constant 0.000000e+00 : f32
    %26 = arith.addf %cst_10, %25 : f32
    %27 = tpu.reciprocal %7 {approx = true} : vector<4x256xf32> -> vector<4x256xf32>
    %28 = arith.mulf %8, %27 : vector<4x256xf32>
    %29 = math.absf %28 : vector<4x256xf32>
    %cst_11 = arith.constant 2.41421366 : f32
    %30 = vector.broadcast %cst_11 : f32 to vector<4x256xf32>
    %31 = arith.cmpf ogt, %29, %30 : vector<4x256xf32>
    %cst_12 = arith.constant 0.414213568 : f32
    %32 = vector.broadcast %cst_12 : f32 to vector<4x256xf32>
    %33 = arith.cmpf ogt, %29, %32 : vector<4x256xf32>
    %cst_13 = arith.constant 1.000000e-30 : f32
    %34 = vector.broadcast %cst_13 : f32 to vector<4x256xf32>
    %35 = arith.maximumf %29, %34 : vector<4x256xf32>
    %36 = tpu.reciprocal %35 {approx = true} : vector<4x256xf32> -> vector<4x256xf32>
    %cst_14 = arith.constant 1.000000e+00 : f32
    %37 = vector.broadcast %cst_14 : f32 to vector<4x256xf32>
    %38 = arith.addf %29, %37 : vector<4x256xf32>
    %39 = tpu.reciprocal %38 {approx = true} : vector<4x256xf32> -> vector<4x256xf32>
    %cst_15 = arith.constant 0.000000e+00 : f32
    %40 = vector.broadcast %cst_15 : f32 to vector<4x256xf32>
    %41 = arith.subf %40, %36 : vector<4x256xf32>
    %cst_16 = arith.constant 1.000000e+00 : f32
    %42 = vector.broadcast %cst_16 : f32 to vector<4x256xf32>
    %43 = arith.subf %29, %42 : vector<4x256xf32>
    %44 = arith.mulf %43, %39 : vector<4x256xf32>
    %45 = arith.select %33, %44, %29 : vector<4x256xi1>, vector<4x256xf32>
    %46 = arith.select %31, %41, %45 : vector<4x256xi1>, vector<4x256xf32>
    %cst_17 = arith.constant 3.14159274 : f32
    %cst_18 = arith.constant 5.000000e-01 : f32
    %47 = arith.mulf %cst_17, %cst_18 : f32
    %cst_19 = arith.constant 3.14159274 : f32
    %cst_20 = arith.constant 2.500000e-01 : f32
    %48 = arith.mulf %cst_19, %cst_20 : f32
    %cst_21 = arith.constant 0.000000e+00 : f32
    %49 = vector.broadcast %48 : f32 to vector<4x256xf32>
    %50 = vector.broadcast %cst_21 : f32 to vector<4x256xf32>
    %51 = arith.select %33, %49, %50 : vector<4x256xi1>, vector<4x256xf32>
    %52 = vector.broadcast %47 : f32 to vector<4x256xf32>
    %53 = arith.select %31, %52, %51 : vector<4x256xi1>, vector<4x256xf32>
    %54 = arith.mulf %46, %46 : vector<4x256xf32>
    %cst_22 = arith.constant 0.0805374458 : f32
    %55 = vector.broadcast %cst_22 : f32 to vector<4x256xf32>
    %56 = arith.mulf %55, %54 : vector<4x256xf32>
    %cst_23 = arith.constant 0.138776854 : f32
    %57 = vector.broadcast %cst_23 : f32 to vector<4x256xf32>
    %58 = arith.subf %56, %57 : vector<4x256xf32>
    %59 = arith.mulf %58, %54 : vector<4x256xf32>
    %cst_24 = arith.constant 0.199777111 : f32
    %60 = vector.broadcast %cst_24 : f32 to vector<4x256xf32>
    %61 = arith.addf %59, %60 : vector<4x256xf32>
    %62 = arith.mulf %61, %54 : vector<4x256xf32>
    %cst_25 = arith.constant 0.333329499 : f32
    %63 = vector.broadcast %cst_25 : f32 to vector<4x256xf32>
    %64 = arith.subf %62, %63 : vector<4x256xf32>
    %65 = arith.mulf %64, %54 : vector<4x256xf32>
    %66 = arith.mulf %65, %46 : vector<4x256xf32>
    %67 = arith.addf %66, %46 : vector<4x256xf32>
    %68 = arith.addf %53, %67 : vector<4x256xf32>
    %cst_26 = arith.constant 0.000000e+00 : f32
    %69 = vector.broadcast %cst_26 : f32 to vector<4x256xf32>
    %70 = arith.cmpf olt, %28, %69 : vector<4x256xf32>
    %cst_27 = arith.constant 0.000000e+00 : f32
    %71 = vector.broadcast %cst_27 : f32 to vector<4x256xf32>
    %72 = arith.subf %71, %68 : vector<4x256xf32>
    %73 = arith.select %70, %72, %68 : vector<4x256xi1>, vector<4x256xf32>
    %cst_28 = arith.constant 0.000000e+00 : f32
    %74 = vector.broadcast %cst_28 : f32 to vector<4x256xf32>
    %75 = arith.cmpf ogt, %7, %74 : vector<4x256xf32>
    %cst_29 = arith.constant 0.000000e+00 : f32
    %76 = vector.broadcast %cst_29 : f32 to vector<4x256xf32>
    %77 = arith.cmpf olt, %7, %76 : vector<4x256xf32>
    %cst_30 = arith.constant 0.000000e+00 : f32
    %78 = vector.broadcast %cst_30 : f32 to vector<4x256xf32>
    %79 = arith.cmpf oge, %8, %78 : vector<4x256xf32>
    %cst_31 = arith.constant 3.14159274 : f32
    %80 = vector.broadcast %cst_31 : f32 to vector<4x256xf32>
    %81 = arith.addf %73, %80 : vector<4x256xf32>
    %cst_32 = arith.constant 3.14159274 : f32
    %82 = vector.broadcast %cst_32 : f32 to vector<4x256xf32>
    %83 = arith.subf %73, %82 : vector<4x256xf32>
    %84 = arith.select %79, %81, %83 : vector<4x256xi1>, vector<4x256xf32>
    %cst_33 = arith.constant 0.000000e+00 : f32
    %85 = vector.broadcast %cst_33 : f32 to vector<4x256xf32>
    %86 = arith.cmpf ogt, %8, %85 : vector<4x256xf32>
    %cst_34 = arith.constant 3.14159274 : f32
    %cst_35 = arith.constant 5.000000e-01 : f32
    %87 = arith.mulf %cst_34, %cst_35 : f32
    %cst_36 = arith.constant 0.000000e+00 : f32
    %88 = vector.broadcast %cst_36 : f32 to vector<4x256xf32>
    %89 = arith.cmpf olt, %8, %88 : vector<4x256xf32>
    %cst_37 = arith.constant 0.000000e+00 : f32
    %cst_38 = arith.constant 3.14159274 : f32
    %90 = arith.subf %cst_37, %cst_38 : f32
    %cst_39 = arith.constant 5.000000e-01 : f32
    %91 = arith.mulf %90, %cst_39 : f32
    %cst_40 = arith.constant 0.000000e+00 : f32
    %92 = vector.broadcast %91 : f32 to vector<4x256xf32>
    %93 = vector.broadcast %cst_40 : f32 to vector<4x256xf32>
    %94 = arith.select %89, %92, %93 : vector<4x256xi1>, vector<4x256xf32>
    %95 = vector.broadcast %87 : f32 to vector<4x256xf32>
    %96 = arith.select %86, %95, %94 : vector<4x256xi1>, vector<4x256xf32>
    %97 = arith.select %77, %84, %96 : vector<4x256xi1>, vector<4x256xf32>
    %98 = arith.select %75, %73, %97 : vector<4x256xi1>, vector<4x256xf32>
    %99 = tpu.reciprocal %9 {approx = true} : vector<4x256xf32> -> vector<4x256xf32>
    %100 = arith.mulf %10, %99 : vector<4x256xf32>
    %101 = math.absf %100 : vector<4x256xf32>
    %cst_41 = arith.constant 2.41421366 : f32
    %102 = vector.broadcast %cst_41 : f32 to vector<4x256xf32>
    %103 = arith.cmpf ogt, %101, %102 : vector<4x256xf32>
    %cst_42 = arith.constant 0.414213568 : f32
    %104 = vector.broadcast %cst_42 : f32 to vector<4x256xf32>
    %105 = arith.cmpf ogt, %101, %104 : vector<4x256xf32>
    %cst_43 = arith.constant 1.000000e-30 : f32
    %106 = vector.broadcast %cst_43 : f32 to vector<4x256xf32>
    %107 = arith.maximumf %101, %106 : vector<4x256xf32>
    %108 = tpu.reciprocal %107 {approx = true} : vector<4x256xf32> -> vector<4x256xf32>
    %cst_44 = arith.constant 1.000000e+00 : f32
    %109 = vector.broadcast %cst_44 : f32 to vector<4x256xf32>
    %110 = arith.addf %101, %109 : vector<4x256xf32>
    %111 = tpu.reciprocal %110 {approx = true} : vector<4x256xf32> -> vector<4x256xf32>
    %cst_45 = arith.constant 0.000000e+00 : f32
    %112 = vector.broadcast %cst_45 : f32 to vector<4x256xf32>
    %113 = arith.subf %112, %108 : vector<4x256xf32>
    %cst_46 = arith.constant 1.000000e+00 : f32
    %114 = vector.broadcast %cst_46 : f32 to vector<4x256xf32>
    %115 = arith.subf %101, %114 : vector<4x256xf32>
    %116 = arith.mulf %115, %111 : vector<4x256xf32>
    %117 = arith.select %105, %116, %101 : vector<4x256xi1>, vector<4x256xf32>
    %118 = arith.select %103, %113, %117 : vector<4x256xi1>, vector<4x256xf32>
    %cst_47 = arith.constant 3.14159274 : f32
    %cst_48 = arith.constant 5.000000e-01 : f32
    %119 = arith.mulf %cst_47, %cst_48 : f32
    %cst_49 = arith.constant 3.14159274 : f32
    %cst_50 = arith.constant 2.500000e-01 : f32
    %120 = arith.mulf %cst_49, %cst_50 : f32
    %cst_51 = arith.constant 0.000000e+00 : f32
    %121 = vector.broadcast %120 : f32 to vector<4x256xf32>
    %122 = vector.broadcast %cst_51 : f32 to vector<4x256xf32>
    %123 = arith.select %105, %121, %122 : vector<4x256xi1>, vector<4x256xf32>
    %124 = vector.broadcast %119 : f32 to vector<4x256xf32>
    %125 = arith.select %103, %124, %123 : vector<4x256xi1>, vector<4x256xf32>
    %126 = arith.mulf %118, %118 : vector<4x256xf32>
    %cst_52 = arith.constant 0.0805374458 : f32
    %127 = vector.broadcast %cst_52 : f32 to vector<4x256xf32>
    %128 = arith.mulf %127, %126 : vector<4x256xf32>
    %cst_53 = arith.constant 0.138776854 : f32
    %129 = vector.broadcast %cst_53 : f32 to vector<4x256xf32>
    %130 = arith.subf %128, %129 : vector<4x256xf32>
    %131 = arith.mulf %130, %126 : vector<4x256xf32>
    %cst_54 = arith.constant 0.199777111 : f32
    %132 = vector.broadcast %cst_54 : f32 to vector<4x256xf32>
    %133 = arith.addf %131, %132 : vector<4x256xf32>
    %134 = arith.mulf %133, %126 : vector<4x256xf32>
    %cst_55 = arith.constant 0.333329499 : f32
    %135 = vector.broadcast %cst_55 : f32 to vector<4x256xf32>
    %136 = arith.subf %134, %135 : vector<4x256xf32>
    %137 = arith.mulf %136, %126 : vector<4x256xf32>
    %138 = arith.mulf %137, %118 : vector<4x256xf32>
    %139 = arith.addf %138, %118 : vector<4x256xf32>
    %140 = arith.addf %125, %139 : vector<4x256xf32>
    %cst_56 = arith.constant 0.000000e+00 : f32
    %141 = vector.broadcast %cst_56 : f32 to vector<4x256xf32>
    %142 = arith.cmpf olt, %100, %141 : vector<4x256xf32>
    %cst_57 = arith.constant 0.000000e+00 : f32
    %143 = vector.broadcast %cst_57 : f32 to vector<4x256xf32>
    %144 = arith.subf %143, %140 : vector<4x256xf32>
    %145 = arith.select %142, %144, %140 : vector<4x256xi1>, vector<4x256xf32>
    %cst_58 = arith.constant 0.000000e+00 : f32
    %146 = vector.broadcast %cst_58 : f32 to vector<4x256xf32>
    %147 = arith.cmpf ogt, %9, %146 : vector<4x256xf32>
    %cst_59 = arith.constant 0.000000e+00 : f32
    %148 = vector.broadcast %cst_59 : f32 to vector<4x256xf32>
    %149 = arith.cmpf olt, %9, %148 : vector<4x256xf32>
    %cst_60 = arith.constant 0.000000e+00 : f32
    %150 = vector.broadcast %cst_60 : f32 to vector<4x256xf32>
    %151 = arith.cmpf oge, %10, %150 : vector<4x256xf32>
    %cst_61 = arith.constant 3.14159274 : f32
    %152 = vector.broadcast %cst_61 : f32 to vector<4x256xf32>
    %153 = arith.addf %145, %152 : vector<4x256xf32>
    %cst_62 = arith.constant 3.14159274 : f32
    %154 = vector.broadcast %cst_62 : f32 to vector<4x256xf32>
    %155 = arith.subf %145, %154 : vector<4x256xf32>
    %156 = arith.select %151, %153, %155 : vector<4x256xi1>, vector<4x256xf32>
    %cst_63 = arith.constant 0.000000e+00 : f32
    %157 = vector.broadcast %cst_63 : f32 to vector<4x256xf32>
    %158 = arith.cmpf ogt, %10, %157 : vector<4x256xf32>
    %cst_64 = arith.constant 3.14159274 : f32
    %cst_65 = arith.constant 5.000000e-01 : f32
    %159 = arith.mulf %cst_64, %cst_65 : f32
    %cst_66 = arith.constant 0.000000e+00 : f32
    %160 = vector.broadcast %cst_66 : f32 to vector<4x256xf32>
    %161 = arith.cmpf olt, %10, %160 : vector<4x256xf32>
    %cst_67 = arith.constant 0.000000e+00 : f32
    %cst_68 = arith.constant 3.14159274 : f32
    %162 = arith.subf %cst_67, %cst_68 : f32
    %cst_69 = arith.constant 5.000000e-01 : f32
    %163 = arith.mulf %162, %cst_69 : f32
    %cst_70 = arith.constant 0.000000e+00 : f32
    %164 = vector.broadcast %163 : f32 to vector<4x256xf32>
    %165 = vector.broadcast %cst_70 : f32 to vector<4x256xf32>
    %166 = arith.select %161, %164, %165 : vector<4x256xi1>, vector<4x256xf32>
    %167 = vector.broadcast %159 : f32 to vector<4x256xf32>
    %168 = arith.select %158, %167, %166 : vector<4x256xi1>, vector<4x256xf32>
    %169 = arith.select %149, %156, %168 : vector<4x256xi1>, vector<4x256xf32>
    %170 = arith.select %147, %145, %169 : vector<4x256xi1>, vector<4x256xf32>
    %171 = arith.subf %98, %170 : vector<4x256xf32>
    %172 = arith.mulf %171, %171 : vector<4x256xf32>
    %173 = vector.shape_cast %172 : vector<4x256xf32> to vector<1x4x256xf32>
    %cst_71 = arith.constant dense<0.000000e+00> : vector<1xf32>
    %174 = vector.multi_reduction <add>, %173, %cst_71 [1, 2] : vector<1x4x256xf32> to vector<1xf32>
    %175 = vector.shape_cast %174 : vector<1xf32> to vector<1x1x1xf32>
    %176 = vector.extract %175[0, 0, 0] : f32 from vector<1x1x1xf32>
    %cst_72 = arith.constant 1.000000e+00 : f32
    %177 = arith.mulf %cst_72, %176 : f32
    %178 = arith.addf %26, %177 : f32
    %179 = vector.broadcast %178 : f32 to vector<1x1x128xf32>
    %c0_73 = arith.constant 0 : index
    %c0_74 = arith.constant 0 : index
    %c0_75 = arith.constant 0 : index
    %180 = vector.load %arg4[%c0_73, %c0_74, %c0_75] : memref<1x1x128xf32, #tpu.memory_space<vmem>>, vector<1x1x128xf32>
    tpu.vector_store %arg4[%c0_73, %c0_74, %c0_75], %179 {strides = array<i32>} : memref<1x1x128xf32, #tpu.memory_space<vmem>>, vector<1x1x128xf32>,
    return
  }
  func.func @transform_0(%arg0: i32) -> (i32, i32, i32) {
    %c0_i32 = arith.constant 0 : i32
    %c0_i32_0 = arith.constant 0 : i32
    %c0_i32_1 = arith.constant 0 : i32
    return %arg0, %c0_i32, %c0_i32_0 : i32, i32, i32
  }
  func.func @transform_1(%arg0: i32) -> (i32, i32, i32) {
    %c0_i32 = arith.constant 0 : i32
    %c0_i32_0 = arith.constant 0 : i32
    %c0_i32_1 = arith.constant 0 : i32
    return %arg0, %c0_i32, %c0_i32_0 : i32, i32, i32
  }
  func.func @transform_2(%arg0: i32) -> (i32, i32) {
    %c0_i32 = arith.constant 0 : i32
    %c0_i32_0 = arith.constant 0 : i32
    %c0_i32_1 = arith.constant 0 : i32
    return %c0_i32, %c0_i32_0 : i32, i32
  }
  func.func @transform_3(%arg0: i32) -> (i32, i32, i32) {
    %c0_i32 = arith.constant 0 : i32
    %c0_i32_0 = arith.constant 0 : i32
    %c0_i32_1 = arith.constant 0 : i32
    return %arg0, %c0_i32, %c0_i32_0 : i32, i32, i32
  }
}

</mosaic_0001>

<bundles_post_ra>
// kernel: tpu_custom_call.1
= control target key start
LH: loop header
LB: loop body
LE: loop exit
PB: predicated region body
PF: predicated region fallthrough
CT: control target
= control target key end

     0   :  { %s2341_s0 = inlined_call_operand.hbm [shape: f32[2,4,256], index: 0, kind: input, shape index: {}]   ;;  %s2342_s1 = inlined_call_operand.hbm [shape: f32[2,4,256], index: 1, kind: input, shape index: {}]   ;;  %s2343_s2 = inlined_call_operand.hbm [shape: f32[256,512], index: 2, kind: input, shape index: {}]   ;;  %s2344_s3 = inlined_call_operand.hbm [shape: f32[2,1,128], index: 3, kind: output, shape index: {}]  }
   0x1   :  { %2411 = sst [smem:[#allocation80_spill]] %s2343_s2 }
   0x2   :  { %8 = vsyncpa [#allocation3], 0 }
   0x3   :  { %10 = vsyncpa [#allocation3 + $0x1], 0 }
   0x4   :  { %11 = vsyncpa [#allocation6], 0 }
   0x5   :  { %13 = vsyncpa [#allocation6 + $0x1], 0 }
   0x6   :  { %14 = vsyncpa [#allocation4], 0 }
   0x7   :  { %16 = vsyncpa [#allocation4 + $0x1], 0  ;;  %s1407_s12 = smov 0   ;;  %s1409_s13 = smov 0  }
   0x8   :  { %s1411_s14 = smov 0   ;;  %s1413_s15 = smov 0  }
   0x9 LB: > { %s2412_s2 = sld [smem:[#allocation80_spill]]  ;;  %s1431_s19 = sadd.s32 4294967295, %s1381_s15   ;;  %s1381_s15 = sphi %s1413_s15, %s2557_s15   ;;  %s1377_s14 = sphi %s1411_s14, %s2556_s14   ;;  %s1373_s13 = sphi %s1409_s13, %s2555_s13   ;;  %s1369_s12 = sphi %s1407_s12, %s2554_s12  }
   0xa   : > { %p1083_p0 = scmp.ge.s32.totalorder %s1381_s15, 1  ;;  %p43_p1 = scmp.eq.s32.totalorder %s1431_s19, 0 }
   0xb   : > { %p126_p2 = scmp.lt.s32.totalorder %s1381_s15, 3  ;;  %s1383_s21 = smov [#allocation7]  }
   0xc   : > { %s139_s22 = sshll.u32 %s1383_s21, 4  ;;  %s1384_s23 = smov 512   ;;  %s140_s22 = int_to_ptr.vmem [resolvable:$true] %s139_s22 }
   0xd   : > { %p1436_p3 = pnand %p1083_p0, %p126_p2  ;;  %s1385_s24 = smov 32  }
   0xe   : > { %s1082_s25 = sadd.s32 4294967294, %s1381_s15   ;;  %s1447_s26 = sadd.s32 1, %s1381_s15  }
   0xf   : > { %s137_s18 = sshll.u32 %s2412_s2, 4  ;;  %p1130_p4 = pneg %p1436_p3  ;;  %s138_s18 = int_to_ptr.hbm [resolvable:$true] %s137_s18 }
  0x10   : > { %s29_s27 = sadd.s32 1, %s1377_s14  ;;  %s26_s28 = ssub.s32 %s1381_s15, %s1447_s26 }
  0x11   : > { %p1131_p6 = pnand %p1130_p4, %p43_p1  ;;  %p36_p7 = scmp.ne.s32.totalorder %s1377_s14, %s1373_s13 }
  0x12   : > { %p27_p8 = scmp.eq.s32.totalorder %s26_s28, 0  ;;  %p37_p9 = scmp.eq.s32.totalorder %s1381_s15, 0 }
  0x13   : > { %1133 = dma.hbm_to_vmem [thread:$0]  (!%p1131_p6), %s138_s18, 16384, %s140_s22, [#allocation6], %s1384_s23, %s1384_s23, %s1385_s24  }
  0x14   : > { %p42_p10 = scmp.ne.s32.totalorder %s1373_s13, %s1369_s12  ;;  %p113_p11 = scmp.eq.s32.totalorder %s1431_s19, 1 }
  0x15   : > { %s1459_s29 = scalar_select %p27_p8, %s1377_s14, %s29_s27  }
  0x16   : > { %p1461_p12 = por %p37_p9, %p36_p7  ;;  %p1467_p13 = por %p43_p1, %p42_p10 }
  0x17   : > { %2414 = sst [smem:[#allocation13_spill]] %s1459_s29  ;;  %p1471_p0 = por %p113_p11, %p36_p7 }
  0x18   : > { %p119_p2 = scmp.eq.s32.totalorder %s1082_s25, 1  ;;  %p1146_p4 = scmp.lt.s32.totalorder %s1381_s15, 2 }
  0x19   : > { %s153_s6 = sand.u32 1, %s1377_s14   ;;  %s1114_s9 = sshll.u32 %s1381_s15, 3 }
  0x1a   : > { %p1477_p6 = por %p119_p2, %p42_p10  ;;  %s1086_s8 = sshll.u32 %s153_s6, 3 }
  0x1b   : > { %s162_s16 = scalar_lea.hbm %s2341_s0, %s1114_s9  ;;  %s157_s18 = scalar_lea.vmem [#allocation2], %s1086_s8 }
  0x1c   : > { %s164_s17 = sshll.u32 %s162_s16, 4  ;;  %s166_s21 = sshll.u32 %s157_s18, 4  ;;  %s165_s17 = int_to_ptr.hbm [resolvable:$true] %s164_s17  ;;  %s167_s21 = int_to_ptr.vmem [resolvable:$true] %s166_s21 }
  0x1d   : > { %p1487_p7 = pnand %p1146_p4, %p1461_p12  ;;  %s182_s25 = scalar_lea.hbm %s2342_s1, %s1114_s9 }
  0x1e   : > { %s173_s27 = sand.u32 1, %s1381_s15   ;;  %s154_s28 = scalar_lea.sflag [#allocation3], %s153_s6 }
  0x1f   : > { %s1247_s10 = sshra.s32 %s165_s17, 4  ;;  %p1251_p9 = pneg %p1487_p7  ;;  %s1248_s10 = int_to_ptr.hbm [resolvable:$true] %s1247_s10 }
  0x20   : > { %s1249_s11 = scalar_lea.hbm %s1248_s10, 8  ;;  %s1254_s18 = scalar_lea.hbm %s2341_s0, 16 }
  0x21   : > { %p1250_p8 = scmp.ne.s32.totalorder %s1248_s10, %s1249_s11  ;;  %p1255_p12 = scmp.lt.s32.totalorder %s1248_s10, %s2341_s0 }
  0x22   : > { %p1256_p2 = scmp.lt.s32.totalorder %s1254_s18, %s1249_s11 }
  0x23   : > { %p1252_p10 = pnand %p1251_p9, %p1250_p8 }
  0x24   : > { %p1257_p4 = por %p1256_p2, %p1255_p12 }
  0x25   : > { %p1253_p11 = pneg %p1252_p10 }
  0x27   : > { %p1258_p5 = pnand %p1257_p4, %p1253_p11 }
  0x29   : > { %1261 = shalt.err (!%p1258_p5)
}
  0x2a   : > { %1137 = dma.hbm_to_vmem [thread:$0]  (!%p1487_p7), %s165_s17, 128, %s167_s21, %s154_s28  }
  0x2b   : > { %s184_s6 = sshll.u32 %s182_s25, 4  ;;  %s177_s9 = scalar_lea.vmem [#allocation5], %s1086_s8  ;;  %s185_s6 = int_to_ptr.hbm [resolvable:$true] %s184_s6 }
  0x2c   : > { %s186_s2 = sshll.u32 %s177_s9, 4  ;;  %s174_s29 = scalar_lea.sflag [#allocation6], %s173_s27  ;;  %s187_s2 = int_to_ptr.vmem [resolvable:$true] %s186_s2 }
  0x2d   : > { %s1277_s30 = sshra.s32 %s185_s6, 4  ;;  %s1284_s18 = scalar_lea.hbm %s2342_s1, 16  ;;  %s1278_s30 = int_to_ptr.hbm [resolvable:$true] %s1277_s30 }
  0x2e   : > { %s1279_s16 = scalar_lea.hbm %s1278_s30, 8  ;;  %p1285_p5 = scmp.lt.s32.totalorder %s1278_s30, %s2342_s1 }
  0x2f   : > { %p1280_p8 = scmp.ne.s32.totalorder %s1278_s30, %s1279_s16  ;;  %p1286_p11 = scmp.lt.s32.totalorder %s1284_s18, %s1279_s16 }
  0x31   : > { %p1282_p10 = pnand %p1280_p8, %p1251_p9  ;;  %p1287_p2 = por %p1286_p11, %p1285_p5 }
  0x33   : > { %p1283_p12 = pneg %p1282_p10 }
  0x35   : > { %p1288_p4 = pnand %p1287_p2, %p1283_p12 }
  0x37   : > { %1291 = shalt.err (!%p1288_p4)
}
  0x38   : > { %1140 = dma.hbm_to_vmem [thread:$0]  (!%p1487_p7), %s185_s6, 128, %s187_s2, %s174_s29  }
  0x39   : > { %195 = sbr.rel (%p1436_p3) target bundleno = 606 (0x25e), region = 32 }
  0x3e   : > { %s1522_s8 = sand.u32 1, %s1373_s13  }
  0x3f   : > { %s1093_s21 = sshll.u32 %s1522_s8, 3  ;;  %s198_s25 = scalar_lea.sflag [#allocation3], %s1522_s8 }
  0x40   : > { %s1526_s27 = scalar_lea.vmem [#allocation2], %s1093_s21 }
  0x41   : > { %1352 = dma.done.wait (%p1467_p13), %s198_s25, 128  }
  0x42   : > { %1354 = vsyncadd (%p1467_p13), %s198_s25, 4294967168  ;;  %s207_s2 = sand.u32 1, %s1431_s19   ;;  %s1533_s29 = scalar_lea.vmem [#allocation5], %s1093_s21 }
  0x43   : > { %s208_s20 = scalar_lea.sflag [#allocation6], %s207_s2 }
  0x44   : > { %1356 = dma.done.wait (%p1467_p13), %s208_s20, 128  }
  0x45   : > { %1358 = vsyncadd (%p1467_p13), %s208_s20, 4294967168 }
  0x46   : > { %1360 = dma.done.wait (%p43_p1), [#allocation6], 16384  }
  0x47   : > { %1362 = vsyncadd (%p43_p1), [#allocation6], 4294950912  ;;  %v1543_v0 = vld [vmem:[#allocation7 + $0x1e0] sm:$0xff]  ;;  %v1547_v2 = vld [vmem:[#allocation7 + $0x1e8] sm:$0xff]  ;;  %s980_s28 = scalar_lea.hbm %s2344_s3, %s1431_s19  ;;  %s243_s24 = scalar_lea.vmem [#allocation8], %s1522_s8 }
  0x48   : > { %v1545_v1 = vld [vmem:[#allocation7 + $0x3e0] sm:$0xff]  ;;  %379 = vmatpush.msra.mxu0 %v1543_v0  ;;  %v1551_v3 = vld [vmem:[#allocation7 + $0x3e8] sm:$0xff]  ;;  %419 = vmatpush.msra.mxu2 %v1547_v2  ;;  %s982_s6 = sshll.u32 %s243_s24, 4  ;;  %s984_s30 = sshll.u32 %s980_s28, 4  ;;  %s983_s6 = int_to_ptr.vmem [resolvable:$true] %s982_s6  ;;  %s985_s30 = int_to_ptr.hbm [resolvable:$true] %s984_s30 }
  0x49   : > { %399 = vmatpush.msra.mxu1 %v1545_v1  ;;  %v1553_v4 = vld [vmem:[#allocation7 + $0x1c0] sm:$0xff]  ;;  %439 = vmatpush.msra.mxu3 %v1551_v3  ;;  %v1559_v6 = vld [vmem:[#allocation7 + $0x1c8] sm:$0xff]  ;;  %s972_s11 = scalar_lea.sflag [#allocation4], %s1522_s8  ;;  %s1321_s18 = sshra.s32 %s985_s30, 4  ;;  %s1322_s18 = int_to_ptr.hbm [resolvable:$true] %s1321_s18 }
  0x4a   : > { %v1555_v5 = vld [vmem:[#allocation7 + $0x3c0] sm:$0xff]  ;;  %v1561_v7 = vld [vmem:[#allocation7 + $0x3c8] sm:$0xff]  ;;  %380 = vmatpush.msra.mxu0 %v1553_v4  ;;  %420 = vmatpush.msra.mxu2 %v1559_v6  ;;  %s1323_s23 = scalar_lea.hbm %s1322_s18, 1  ;;  %s1327_s21 = scalar_lea.hbm %s2344_s3, 2 }
  0x4b   : > { %v1563_v8 = vld [vmem:[#allocation7 + $0x1a0] sm:$0xff]  ;;  %400 = vmatpush.msra.mxu1 %v1555_v5  ;;  %v1569_v10 = vld [vmem:[#allocation7 + $0x1a8] sm:$0xff]  ;;  %440 = vmatpush.msra.mxu3 %v1561_v7  ;;  %p1324_p1 = scmp.ne.s32.totalorder %s1322_s18, %s1323_s23  ;;  %p1328_p7 = scmp.lt.s32.totalorder %s1322_s18, %s2344_s3 }
  0x4c   : > { %v1567_v9 = vld [vmem:[#allocation7 + $0x3a0] sm:$0xff]  ;;  %v1571_v11 = vld [vmem:[#allocation7 + $0x3a8] sm:$0xff]  ;;  %381 = vmatpush.msra.mxu0 %v1563_v8  ;;  %421 = vmatpush.msra.mxu2 %v1569_v10  ;;  %p1329_p9 = scmp.lt.s32.totalorder %s1327_s21, %s1323_s23 }
  0x4d   : > { %v1575_v12 = vld [vmem:[#allocation7 + $0x180] sm:$0xff]  ;;  %401 = vmatpush.msra.mxu1 %v1567_v9  ;;  %v1581_v14 = vld [vmem:[#allocation7 + $0x188] sm:$0xff]  ;;  %441 = vmatpush.msra.mxu3 %v1571_v11  ;;  %p1325_p3 = pnand %p1324_p1, %p1471_p0 }
  0x4e   : > { %v1577_v13 = vld [vmem:[#allocation7 + $0x380] sm:$0xff]  ;;  %v1583_v15 = vld [vmem:[#allocation7 + $0x388] sm:$0xff]  ;;  %382 = vmatpush.msra.mxu0 %v1575_v12  ;;  %422 = vmatpush.msra.mxu2 %v1581_v14  ;;  %p1330_p8 = por %p1329_p9, %p1328_p7 }
  0x4f   : > { %v1587_v16 = vld [vmem:[#allocation7 + $0x160] sm:$0xff]  ;;  %402 = vmatpush.msra.mxu1 %v1577_v13  ;;  %v1593_v18 = vld [vmem:[#allocation7 + $0x168] sm:$0xff]  ;;  %442 = vmatpush.msra.mxu3 %v1583_v15  ;;  %p1326_p13 = pneg %p1325_p3 }
  0x50   : > { %v1589_v17 = vld [vmem:[#allocation7 + $0x360] sm:$0xff]  ;;  %v1595_v19 = vld [vmem:[#allocation7 + $0x368] sm:$0xff]  ;;  %383 = vmatpush.msra.mxu0 %v1587_v16  ;;  %423 = vmatpush.msra.mxu2 %v1593_v18 }
  0x51   : > { %v1599_v20 = vld [vmem:[#allocation7 + $0x140] sm:$0xff]  ;;  %403 = vmatpush.msra.mxu1 %v1589_v17  ;;  %v1605_v22 = vld [vmem:[#allocation7 + $0x148] sm:$0xff]  ;;  %443 = vmatpush.msra.mxu3 %v1595_v19  ;;  %p1331_p10 = pnand %p1330_p8, %p1326_p13 }
  0x52   : > { %v1601_v21 = vld [vmem:[#allocation7 + $0x340] sm:$0xff]  ;;  %v1607_v23 = vld [vmem:[#allocation7 + $0x348] sm:$0xff]  ;;  %384 = vmatpush.msra.mxu0 %v1599_v20  ;;  %424 = vmatpush.msra.mxu2 %v1605_v22 }
  0x53   : > { %v1611_v24 = vld [vmem:[#allocation7 + $0x120] sm:$0xff]  ;;  %404 = vmatpush.msra.mxu1 %v1601_v21  ;;  %v1617_v26 = vld [vmem:[#allocation7 + $0x128] sm:$0xff]  ;;  %444 = vmatpush.msra.mxu3 %v1607_v23 }
  0x54   : > { %v1613_v25 = vld [vmem:[#allocation7 + $0x320] sm:$0xff]  ;;  %v1619_v27 = vld [vmem:[#allocation7 + $0x328] sm:$0xff]  ;;  %385 = vmatpush.msra.mxu0 %v1611_v24  ;;  %425 = vmatpush.msra.mxu2 %v1617_v26 }
  0x55   : > { %v1623_v28 = vld [vmem:[#allocation7 + $0x100] sm:$0xff]  ;;  %405 = vmatpush.msra.mxu1 %v1613_v25  ;;  %v1629_v30 = vld [vmem:[#allocation7 + $0x108] sm:$0xff]  ;;  %445 = vmatpush.msra.mxu3 %v1619_v27 }
  0x56   : > { %v1625_v29 = vld [vmem:[#allocation7 + $0x300] sm:$0xff]  ;;  %v1631_v31 = vld [vmem:[#allocation7 + $0x308] sm:$0xff]  ;;  %386 = vmatpush.msra.mxu0 %v1623_v28  ;;  %426 = vmatpush.msra.mxu2 %v1629_v30 }
  0x57   : > { %v1635_v32 = vld [vmem:[#allocation7 + $0xe0] sm:$0xff]  ;;  %406 = vmatpush.msra.mxu1 %v1625_v29  ;;  %v1641_v34 = vld [vmem:[#allocation7 + $0xe8] sm:$0xff]  ;;  %446 = vmatpush.msra.mxu3 %v1631_v31 }
  0x58   : > { %v1637_v33 = vld [vmem:[#allocation7 + $0x2e0] sm:$0xff]  ;;  %v1643_v35 = vld [vmem:[#allocation7 + $0x2e8] sm:$0xff]  ;;  %387 = vmatpush.msra.mxu0 %v1635_v32  ;;  %427 = vmatpush.msra.mxu2 %v1641_v34 }
  0x59   : > { %v1647_v36 = vld [vmem:[#allocation7 + $0xc0] sm:$0xff]  ;;  %407 = vmatpush.msra.mxu1 %v1637_v33  ;;  %v1653_v38 = vld [vmem:[#allocation7 + $0xc8] sm:$0xff]  ;;  %447 = vmatpush.msra.mxu3 %v1643_v35 }
  0x5a   : > { %v1649_v37 = vld [vmem:[#allocation7 + $0x2c0] sm:$0xff]  ;;  %v1655_v39 = vld [vmem:[#allocation7 + $0x2c8] sm:$0xff]  ;;  %388 = vmatpush.msra.mxu0 %v1647_v36  ;;  %428 = vmatpush.msra.mxu2 %v1653_v38 }
  0x5b   : > { %v1659_v40 = vld [vmem:[#allocation7 + $0xa0] sm:$0xff]  ;;  %408 = vmatpush.msra.mxu1 %v1649_v37  ;;  %v1665_v42 = vld [vmem:[#allocation7 + $0xa8] sm:$0xff]  ;;  %448 = vmatpush.msra.mxu3 %v1655_v39 }
  0x5c   : > { %v1661_v41 = vld [vmem:[#allocation7 + $0x2a0] sm:$0xff]  ;;  %v1667_v43 = vld [vmem:[#allocation7 + $0x2a8] sm:$0xff]  ;;  %389 = vmatpush.msra.mxu0 %v1659_v40  ;;  %429 = vmatpush.msra.mxu2 %v1665_v42 }
  0x5d   : > { %v1671_v44 = vld [vmem:[#allocation7 + $0x80] sm:$0xff]  ;;  %409 = vmatpush.msra.mxu1 %v1661_v41  ;;  %v1677_v46 = vld [vmem:[#allocation7 + $0x88] sm:$0xff]  ;;  %449 = vmatpush.msra.mxu3 %v1667_v43 }
  0x5e   : > { %v1673_v45 = vld [vmem:[#allocation7 + $0x280] sm:$0xff]  ;;  %v1679_v47 = vld [vmem:[#allocation7 + $0x288] sm:$0xff]  ;;  %390 = vmatpush.msra.mxu0 %v1671_v44  ;;  %430 = vmatpush.msra.mxu2 %v1677_v46 }
  0x5f   : > { %v1683_v48 = vld [vmem:[#allocation7 + $0x60] sm:$0xff]  ;;  %410 = vmatpush.msra.mxu1 %v1673_v45  ;;  %v1689_v50 = vld [vmem:[#allocation7 + $0x68] sm:$0xff]  ;;  %450 = vmatpush.msra.mxu3 %v1679_v47 }
  0x60   : > { %v1685_v49 = vld [vmem:[#allocation7 + $0x260] sm:$0xff]  ;;  %v1691_v51 = vld [vmem:[#allocation7 + $0x268] sm:$0xff]  ;;  %391 = vmatpush.msra.mxu0 %v1683_v48  ;;  %431 = vmatpush.msra.mxu2 %v1689_v50 }
  0x61   : > { %2420 = vst [vmem:[#allocation14_spill] sm:$0xff] %v1691_v51  ;;  %v1695_v52 = vld [vmem:[#allocation7 + $0x40] sm:$0xff]  ;;  %411 = vmatpush.msra.mxu1 %v1685_v49  ;;  %v1701_v54 = vld [vmem:[#allocation7 + $0x48] sm:$0xff]  ;;  %451 = vmatpush.msra.mxu3 %v1691_v51  ;;  %v1823_v51 = vld [vmem:[#allocation7 + $0x318] sm:$0xff] }
  0x62   : > { %2421 = vst [vmem:[#allocation15_spill] sm:$0xff] %v1695_v52  ;;  %v1697_v53 = vld [vmem:[#allocation7 + $0x240] sm:$0xff]  ;;  %v1703_v55 = vld [vmem:[#allocation7 + $0x248] sm:$0xff]  ;;  %392 = vmatpush.msra.mxu0 %v1695_v52  ;;  %432 = vmatpush.msra.mxu2 %v1701_v54  ;;  %v539_v52 = vld [vmem:[%s1533_s29] sm:$0xff] }
  0x63   : > { %2422 = vst [vmem:[#allocation16_spill] sm:$0xff] %v1697_v53  ;;  %v1707_v56 = vld [vmem:[#allocation7 + $0x20] sm:$0xff]  ;;  %412 = vmatpush.msra.mxu1 %v1697_v53  ;;  %v1713_v58 = vld [vmem:[#allocation7 + $0x28] sm:$0xff]  ;;  %452 = vmatpush.msra.mxu3 %v1703_v55  ;;  %v1731_v53 = vld [vmem:[#allocation7 + $0x1f0] sm:$0xff] }
  0x64   : > { %2423 = vst [vmem:[#allocation17_spill] sm:$0xff] %v1701_v54  ;;  %v1709_v57 = vld [vmem:[#allocation7 + $0x220] sm:$0xff]  ;;  %v1715_v59 = vld [vmem:[#allocation7 + $0x228] sm:$0xff]  ;;  %393 = vmatpush.msra.mxu0 %v1707_v56  ;;  %433 = vmatpush.msra.mxu2 %v1713_v58  ;;  %v1733_v54 = vld [vmem:[#allocation7 + $0x3f0] sm:$0xff] }
  0x65   : > { %2424 = vst [vmem:[#allocation18_spill] sm:$0xff] %v1703_v55  ;;  %v1719_v60 = vld [vmem:[#allocation7] sm:$0xff]  ;;  %413 = vmatpush.msra.mxu1 %v1709_v57  ;;  %v1725_v62 = vld [vmem:[#allocation7 + $0x8] sm:$0xff]  ;;  %453 = vmatpush.msra.mxu3 %v1715_v59  ;;  %v1737_v55 = vld [vmem:[#allocation7 + $0x1f8] sm:$0xff] }
  0x66   : > { %2425 = vst [vmem:[#allocation19_spill] sm:$0xff] %v1707_v56  ;;  %v1721_v61 = vld [vmem:[#allocation7 + $0x200] sm:$0xff]  ;;  %v1727_v63 = vld [vmem:[#allocation7 + $0x208] sm:$0xff]  ;;  %394 = vmatpush.msra.mxu0 %v1719_v60  ;;  %v1739_v56 = vld [vmem:[#allocation7 + $0x3f8] sm:$0xff]  ;;  %434 = vmatpush.msra.mxu2 %v1725_v62 }
  0x67   : > { %2426 = vst [vmem:[#allocation20_spill] sm:$0xff] %v1709_v57  ;;  %414 = vmatpush.msra.mxu1 %v1721_v61  ;;  %454 = vmatpush.msra.mxu3 %v1727_v63  ;;  %v1743_v57 = vld [vmem:[#allocation7 + $0x1d0] sm:$0xff] }
  0x68   : > { %2427 = vst [vmem:[#allocation21_spill] sm:$0xff] %v1713_v58  ;;  %v1745_v58 = vld [vmem:[#allocation7 + $0x3d0] sm:$0xff]  ;;  %459 = vmatpush.msrb.mxu0 %v1731_v53  ;;  %499 = vmatpush.msrb.mxu2 %v1737_v55 }
  0x69   : > { %2428 = vst [vmem:[#allocation22_spill] sm:$0xff] %v1715_v59  ;;  %479 = vmatpush.msrb.mxu1 %v1733_v54  ;;  %v1749_v59 = vld [vmem:[#allocation7 + $0x1d8] sm:$0xff]  ;;  %519 = vmatpush.msrb.mxu3 %v1739_v56 }
  0x6a   : > { %2429 = vst [vmem:[#allocation23_spill] sm:$0xff] %v1719_v60  ;;  %v1751_v60 = vld [vmem:[#allocation7 + $0x3d8] sm:$0xff]  ;;  %460 = vmatpush.msrb.mxu0 %v1743_v57  ;;  %500 = vmatpush.msrb.mxu2 %v1749_v59 }
  0x6b   : > { %2430 = vst [vmem:[#allocation24_spill] sm:$0xff] %v1721_v61  ;;  %480 = vmatpush.msrb.mxu1 %v1745_v58  ;;  %520 = vmatpush.msrb.mxu3 %v1751_v60  ;;  %v1769_v61 = vld [vmem:[#allocation7 + $0x390] sm:$0xff] }
  0x6c   : > { %2431 = vst [vmem:[#allocation25_spill] sm:$0xff] %v1725_v62  ;;  %v1755_v62 = vld [vmem:[#allocation7 + $0x1b0] sm:$0xff] }
  0x6d   : > { %2432 = vst [vmem:[#allocation26_spill] sm:$0xff] %v1727_v63  ;;  %v1757_v63 = vld [vmem:[#allocation7 + $0x3b0] sm:$0xff]  ;;  %461 = vmatpush.msrb.mxu0 %v1755_v62 }
  0x6e   : > { %2433 = vst [vmem:[#allocation27_spill] sm:$0xff] %v1731_v53  ;;  %v1761_v53 = vld [vmem:[#allocation7 + $0x1b8] sm:$0xff]  ;;  %481 = vmatpush.msrb.mxu1 %v1757_v63 }
  0x6f   : > { %2434 = vst [vmem:[#allocation28_spill] sm:$0xff] %v1733_v54  ;;  %v1763_v54 = vld [vmem:[#allocation7 + $0x3b8] sm:$0xff]  ;;  %501 = vmatpush.msrb.mxu2 %v1761_v53 }
  0x70   : > { %2435 = vst [vmem:[#allocation29_spill] sm:$0xff] %v1737_v55  ;;  %v1767_v55 = vld [vmem:[#allocation7 + $0x190] sm:$0xff]  ;;  %521 = vmatpush.msrb.mxu3 %v1763_v54  ;;  %482 = vmatpush.msrb.mxu1 %v1769_v61 }
  0x71   : > { %2436 = vst [vmem:[#allocation30_spill] sm:$0xff] %v1739_v56  ;;  %v1773_v56 = vld [vmem:[#allocation7 + $0x198] sm:$0xff]  ;;  %462 = vmatpush.msrb.mxu0 %v1767_v55 }
  0x72   : > { %2437 = vst [vmem:[#allocation31_spill] sm:$0xff] %v1743_v57  ;;  %v1775_v57 = vld [vmem:[#allocation7 + $0x398] sm:$0xff]  ;;  %502 = vmatpush.msrb.mxu2 %v1773_v56 }
  0x73   : > { %2438 = vst [vmem:[#allocation32_spill] sm:$0xff] %v1745_v58  ;;  %v372_v58 = vld [vmem:[%s1526_s27] sm:$0xff]  ;;  %522 = vmatpush.msrb.mxu3 %v1775_v57 }
  0x74   : > { %2439 = vst [vmem:[#allocation33_spill] sm:$0xff] %v1749_v59  ;;  %v1780_v59 = vld [vmem:[#allocation7 + $0x170] sm:$0xff] }
  0x75   : > { %2440 = vst [vmem:[#allocation34_spill] sm:$0xff] %v1751_v60  ;;  %v1782_v60 = vld [vmem:[#allocation7 + $0x370] sm:$0xff]  ;;  %463 = vmatpush.msrb.mxu0 %v1780_v59 }
  0x76   : > { %2441 = vst [vmem:[#allocation35_spill] sm:$0xff] %v1755_v62  ;;  %v1786_v62 = vld [vmem:[#allocation7 + $0x178] sm:$0xff]  ;;  %483 = vmatpush.msrb.mxu1 %v1782_v60 }
  0x77   : > { %2442 = vst [vmem:[#allocation36_spill] sm:$0xff] %v1757_v63  ;;  %v1788_v63 = vld [vmem:[#allocation7 + $0x378] sm:$0xff]  ;;  %503 = vmatpush.msrb.mxu2 %v1786_v62 }
  0x78   : > { %2443 = vst [vmem:[#allocation37_spill] sm:$0xff] %v1761_v53  ;;  %v1792_v53 = vld [vmem:[#allocation7 + $0x150] sm:$0xff]  ;;  %523 = vmatpush.msrb.mxu3 %v1788_v63 }
  0x79   : > { %2444 = vst [vmem:[#allocation38_spill] sm:$0xff] %v1763_v54  ;;  %v1794_v54 = vld [vmem:[#allocation7 + $0x350] sm:$0xff]  ;;  %464 = vmatpush.msrb.mxu0 %v1792_v53 }
  0x7a   : > { %2445 = vst [vmem:[#allocation39_spill] sm:$0xff] %v1767_v55  ;;  %v1808_v55 = vld [vmem:[#allocation7 + $0x138] sm:$0xff]  ;;  %484 = vmatpush.msrb.mxu1 %v1794_v54 }
  0x7b   : > { %2446 = vst [vmem:[#allocation40_spill] sm:$0xff] %v1769_v61  ;;  %v1800_v61 = vld [vmem:[#allocation7 + $0x358] sm:$0xff] }
  0x7c   : > { %2447 = vst [vmem:[#allocation41_spill] sm:$0xff] %v1773_v56  ;;  %v1804_v56 = vld [vmem:[#allocation7 + $0x130] sm:$0xff]  ;;  %524 = vmatpush.msrb.mxu3 %v1800_v61 }
  0x7d   : > { %2448 = vst [vmem:[#allocation42_spill] sm:$0xff] %v1775_v57  ;;  %v1806_v57 = vld [vmem:[#allocation7 + $0x330] sm:$0xff]  ;;  %465 = vmatpush.msrb.mxu0 %v1804_v56 }
  0x7e   : > { %2449 = vst [vmem:[#allocation43_spill] sm:$0xff] %v1780_v59  ;;  %v1812_v59 = vld [vmem:[#allocation7 + $0x338] sm:$0xff]  ;;  %485 = vmatpush.msrb.mxu1 %v1806_v57 }
  0x7f   : > { %2450 = vst [vmem:[#allocation44_spill] sm:$0xff] %v1782_v60  ;;  %v1814_v60 = vld [vmem:[#allocation7 + $0x110] sm:$0xff]  ;;  %525 = vmatpush.msrb.mxu3 %v1812_v59 }
  0x80   : > { %374 = vst [vmem:[#allocation1] ss:$2 sm:$0xff] %v372_v58  ;;  %v1798_v58 = vld [vmem:[#allocation7 + $0x158] sm:$0xff]  ;;  %466 = vmatpush.msrb.mxu0 %v1814_v60 }
  0x81   : > { %2451 = vst [vmem:[#allocation45_spill] sm:$0xff] %v1786_v62  ;;  %504 = vmatpush.msrb.mxu2 %v1798_v58  ;;  %v1821_v62 = vld [vmem:[#allocation7 + $0x118] sm:$0xff]  ;;  %526 = vmatpush.msrb.mxu3 %v1823_v51 }
  0x82   : > { %2452 = vst [vmem:[#allocation46_spill] sm:$0xff] %v1788_v63  ;;  %v1819_v63 = vld [vmem:[#allocation7 + $0x310] sm:$0xff] }
  0x83   : > { %2453 = vst [vmem:[#allocation47_spill] sm:$0xff] %v1792_v53  ;;  %505 = vmatpush.msrb.mxu2 %v1808_v55  ;;  %486 = vmatpush.msrb.mxu1 %v1819_v63 }
  0x84   : > { %2454 = vst [vmem:[#allocation48_spill] sm:$0xff] %v1794_v54 }
  0x85   : > { %2455 = vst [vmem:[#allocation49_spill] sm:$0xff] %v1798_v58  ;;  %v1833_v58 = vld [vmem:[#allocation7 + $0xf0] sm:$0xff]  ;;  %506 = vmatpush.msrb.mxu2 %v1821_v62 }
  0x86   : > { %2456 = vst [vmem:[#allocation50_spill] sm:$0xff] %v1800_v61  ;;  %v1835_v61 = vld [vmem:[#allocation7 + $0x2f0] sm:$0xff]  ;;  %467 = vmatpush.msrb.mxu0 %v1833_v58 }
  0x87   : > { %2457 = vst [vmem:[#allocation51_spill] sm:$0xff] %v1804_v56  ;;  %v1827_v54 = vld.sshfl [vmem:[#allocation1] sm:$0xff pattern:$0x75316420]  ;;  %487 = vmatpush.msrb.mxu1 %v1835_v61 }
  0x88   : > { %2458 = vst [vmem:[#allocation52_spill] sm:$0xff] %v1806_v57  ;;  %v1829_v53 = vld.sshfl [vmem:[#allocation1 + $0x8] sm:$0xff pattern:$0x75316420]  ;;  %v1839_v56 = vld [vmem:[#allocation7 + $0xf8] sm:$0xff]  ;;  %395 = vmatmul.f32.vlgmr.msra.gmra.mxu0 %v1827_v54  ;;  %435 = vmatmul.f32.vlgmr.msra.gmra.mxu2 %v1827_v54 }
  0x89   : > { %2459 = vst [vmem:[#allocation53_spill] sm:$0xff] %v1808_v55  ;;  %v1841_v57 = vld [vmem:[#allocation7 + $0x2f8] sm:$0xff]  ;;  %v1845_v55 = vld [vmem:[#allocation7 + $0xd0] sm:$0xff]  ;;  %507 = vmatpush.msrb.mxu2 %v1839_v56  ;;  %415 = vmatmul.f32.vlgmr.msra.gmra.mxu1 %v1829_v53 }
  0x8a   : > { %2460 = vst [vmem:[#allocation54_spill] sm:$0xff] %v1812_v59  ;;  %v1847_v59 = vld [vmem:[#allocation7 + $0x2d0] sm:$0xff]  ;;  %527 = vmatpush.msrb.mxu3 %v1841_v57  ;;  %468 = vmatpush.msrb.mxu0 %v1845_v55 }
  0x8b   : > { %2461 = vst [vmem:[#allocation55_spill] sm:$0xff] %v1814_v60  ;;  %v1853_v60 = vld [vmem:[#allocation7 + $0x2d8] sm:$0xff]  ;;  %488 = vmatpush.msrb.mxu1 %v1847_v59  ;;  %455 = vmatmul.f32.vlgmr.msra.gmra.mxu3 %v1829_v53 }
  0x8c   : > { %2462 = vst [vmem:[#allocation56_spill] sm:$0xff] %v1819_v63  ;;  %v1857_v63 = vld [vmem:[#allocation7 + $0xb0] sm:$0xff]  ;;  %528 = vmatpush.msrb.mxu3 %v1853_v60 }
  0x8d   : > { %2463 = vst [vmem:[#allocation57_spill] sm:$0xff] %v1821_v62  ;;  %v1859_v62 = vld [vmem:[#allocation7 + $0x2b0] sm:$0xff]  ;;  %469 = vmatpush.msrb.mxu0 %v1857_v63 }
  0x8e   : > { %2464 = vst [vmem:[#allocation58_spill] sm:$0xff] %v1823_v51  ;;  %v1863_v51 = vld [vmem:[#allocation7 + $0xb8] sm:$0xff]  ;;  %489 = vmatpush.msrb.mxu1 %v1859_v62 }
  0x8f   : > { %2465 = vst [vmem:[#allocation59_spill] sm:$0xff] %v1833_v58  ;;  %v1865_v58 = vld [vmem:[#allocation7 + $0x2b8] sm:$0xff] }
  0x90   : > { %2466 = vst [vmem:[#allocation60_spill] sm:$0xff] %v1835_v61  ;;  %v1869_v61 = vld [vmem:[#allocation7 + $0x90] sm:$0xff]  ;;  %529 = vmatpush.msrb.mxu3 %v1865_v58 }
  0x91   : > { %541 = vst [vmem:[#allocation1] ss:$2 sm:$0xff] %v539_v52  ;;  %v1851_v52 = vld [vmem:[#allocation7 + $0xd8] sm:$0xff]  ;;  %470 = vmatpush.msrb.mxu0 %v1869_v61 }
  0x92   : > { %2467 = vst [vmem:[#allocation61_spill] sm:$0xff] %v1839_v56  ;;  %508 = vmatpush.msrb.mxu2 %v1851_v52  ;;  %v1871_v56 = vld [vmem:[#allocation7 + $0x290] sm:$0xff] }
  0x93   : > { %2468 = vst [vmem:[#allocation62_spill] sm:$0xff] %v1841_v57  ;;  %v1875_v57 = vld [vmem:[#allocation7 + $0x98] sm:$0xff]  ;;  %490 = vmatpush.msrb.mxu1 %v1871_v56 }
  0x94   : > { %2469 = vst [vmem:[#allocation63_spill] sm:$0xff] %v1845_v55  ;;  %v1877_v55 = vld [vmem:[#allocation7 + $0x298] sm:$0xff]  ;;  %509 = vmatpush.msrb.mxu2 %v1863_v51 }
  0x95   : > { %2470 = vst [vmem:[#allocation64_spill] sm:$0xff] %v1847_v59  ;;  %530 = vmatpush.msrb.mxu3 %v1877_v55  ;;  %v1915_v59 = vld [vmem:[#allocation7 + $0x38] sm:$0xff] }
  0x96   : > { %2471 = vst [vmem:[#allocation65_spill] sm:$0xff] %v1851_v52  ;;  %510 = vmatpush.msrb.mxu2 %v1875_v57  ;;  %v1911_v52 = vld [vmem:[#allocation7 + $0x230] sm:$0xff] }
  0x97   : > { %2472 = vst [vmem:[#allocation66_spill] sm:$0xff] %v1853_v60  ;;  %v1885_v60 = vld [vmem:[#allocation7 + $0x70] sm:$0xff] }
  0x98   : > { %2473 = vst [vmem:[#allocation67_spill] sm:$0xff] %v1857_v63  ;;  %v1887_v63 = vld [vmem:[#allocation7 + $0x270] sm:$0xff]  ;;  %471 = vmatpush.msrb.mxu0 %v1885_v60 }
  0x99   : > { %2474 = vst [vmem:[#allocation68_spill] sm:$0xff] %v1859_v62  ;;  %v1891_v62 = vld [vmem:[#allocation7 + $0x78] sm:$0xff]  ;;  %491 = vmatpush.msrb.mxu1 %v1887_v63 }
  0x9a   : > { %2475 = vst [vmem:[#allocation69_spill] sm:$0xff] %v1863_v51  ;;  %v1893_v51 = vld [vmem:[#allocation7 + $0x278] sm:$0xff]  ;;  %511 = vmatpush.msrb.mxu2 %v1891_v62 }
  0x9b   : > { %2476 = vst [vmem:[#allocation70_spill] sm:$0xff] %v1865_v58  ;;  %531 = vmatpush.msrb.mxu3 %v1893_v51  ;;  %v1909_v58 = vld [vmem:[#allocation7 + $0x30] sm:$0xff] }
  0x9c   : > { %2477 = vst [vmem:[#allocation71_spill] sm:$0xff] %v1869_v61  ;;  %v1905_v61 = vld [vmem:[#allocation7 + $0x258] sm:$0xff] }
  0x9d   : > { %2478 = vst [vmem:[#allocation72_spill] sm:$0xff] %v1871_v56  ;;  %v1897_v56 = vld [vmem:[#allocation7 + $0x50] sm:$0xff]  ;;  %532 = vmatpush.msrb.mxu3 %v1905_v61 }
  0x9e   : > { %2479 = vst [vmem:[#allocation73_spill] sm:$0xff] %v1875_v57  ;;  %v1899_v57 = vld [vmem:[#allocation7 + $0x250] sm:$0xff]  ;;  %472 = vmatpush.msrb.mxu0 %v1897_v56 }
  0x9f   : > { %2480 = vst [vmem:[#allocation74_spill] sm:$0xff] %v1877_v55  ;;  %v1903_v55 = vld [vmem:[#allocation7 + $0x58] sm:$0xff]  ;;  %492 = vmatpush.msrb.mxu1 %v1899_v57 }
  0xa0   : > { %2481 = vst [vmem:[#allocation75_spill] sm:$0xff] %v1885_v60  ;;  %v1917_v60 = vld [vmem:[#allocation7 + $0x238] sm:$0xff]  ;;  %512 = vmatpush.msrb.mxu2 %v1903_v55  ;;  %473 = vmatpush.msrb.mxu0 %v1909_v58 }
  0xa1   : > { %2482 = vst [vmem:[#allocation76_spill] sm:$0xff] %v1887_v63  ;;  %v1921_v63 = vld [vmem:[#allocation7 + $0x10] sm:$0xff]  ;;  %493 = vmatpush.msrb.mxu1 %v1911_v52  ;;  %533 = vmatpush.msrb.mxu3 %v1917_v60 }
  0xa2   : > { %2483 = vst [vmem:[#allocation77_spill] sm:$0xff] %v1891_v62  ;;  %v1923_v62 = vld [vmem:[#allocation7 + $0x210] sm:$0xff]  ;;  %513 = vmatpush.msrb.mxu2 %v1915_v59  ;;  %474 = vmatpush.msrb.mxu0 %v1921_v63 }
  0xa3   : > { %2484 = vst [vmem:[#allocation78_spill] sm:$0xff] %v1893_v51  ;;  %v1927_v51 = vld [vmem:[#allocation7 + $0x18] sm:$0xff]  ;;  %494 = vmatpush.msrb.mxu1 %v1923_v62  ;;  %475 = vmatmul.f32.vlgmr.msrb.gmra.mxu0 %v1827_v54 }
  0xa4   : > { %2485 = vst [vmem:[#allocation79_spill] sm:$0xff] %v1897_v56  ;;  %v1929_v56 = vld [vmem:[#allocation7 + $0x218] sm:$0xff]  ;;  %514 = vmatpush.msrb.mxu2 %v1927_v51  ;;  %495 = vmatmul.f32.vlgmr.msrb.gmra.mxu1 %v1829_v53 }
  0xa5   : > { %534 = vmatpush.msrb.mxu3 %v1929_v56  ;;  %515 = vmatmul.f32.vlgmr.msrb.gmra.mxu2 %v1827_v54  ;;  %v2538_v54 = vld [vmem:[#allocation66_spill] sm:$0xff] }
  0xa6   : > { %535 = vmatmul.f32.vlgmr.msrb.gmra.mxu3 %v1829_v53  ;;  %546 = vmatpush.msra.mxu0 %v1543_v0  ;;  %v2486_v0 = vld [vmem:[#allocation14_spill] sm:$0xff]  ;;  %v2537_v53 = vld [vmem:[#allocation65_spill] sm:$0xff] }
  0xa7   : > { %566 = vmatpush.msra.mxu1 %v1545_v1  ;;  %586 = vmatpush.msra.mxu2 %v1547_v2  ;;  %v2487_v1 = vld [vmem:[#allocation15_spill] sm:$0xff]  ;;  %v2488_v2 = vld [vmem:[#allocation16_spill] sm:$0xff] }
  0xa8   : > { %606 = vmatpush.msra.mxu3 %v1551_v3  ;;  %547 = vmatpush.msra.mxu0 %v1553_v4  ;;  %v2489_v3 = vld [vmem:[#allocation17_spill] sm:$0xff]  ;;  %v2490_v4 = vld [vmem:[#allocation18_spill] sm:$0xff] }
  0xa9   : > { %567 = vmatpush.msra.mxu1 %v1555_v5  ;;  %587 = vmatpush.msra.mxu2 %v1559_v6  ;;  %v2491_v5 = vld [vmem:[#allocation19_spill] sm:$0xff]  ;;  %v2492_v6 = vld [vmem:[#allocation20_spill] sm:$0xff] }
  0xaa   : > { %607 = vmatpush.msra.mxu3 %v1561_v7  ;;  %548 = vmatpush.msra.mxu0 %v1563_v8  ;;  %v2493_v7 = vld [vmem:[#allocation21_spill] sm:$0xff]  ;;  %v2494_v8 = vld [vmem:[#allocation22_spill] sm:$0xff] }
  0xab   : > { %568 = vmatpush.msra.mxu1 %v1567_v9  ;;  %588 = vmatpush.msra.mxu2 %v1569_v10  ;;  %v2495_v9 = vld [vmem:[#allocation23_spill] sm:$0xff]  ;;  %v2496_v10 = vld [vmem:[#allocation24_spill] sm:$0xff] }
  0xac   : > { %608 = vmatpush.msra.mxu3 %v1571_v11  ;;  %549 = vmatpush.msra.mxu0 %v1575_v12  ;;  %v2497_v11 = vld [vmem:[#allocation25_spill] sm:$0xff]  ;;  %v2498_v12 = vld [vmem:[#allocation26_spill] sm:$0xff] }
  0xad   : > { %569 = vmatpush.msra.mxu1 %v1577_v13  ;;  %589 = vmatpush.msra.mxu2 %v1581_v14  ;;  %v2499_v13 = vld [vmem:[#allocation27_spill] sm:$0xff]  ;;  %v2500_v14 = vld [vmem:[#allocation28_spill] sm:$0xff] }
  0xae   : > { %609 = vmatpush.msra.mxu3 %v1583_v15  ;;  %550 = vmatpush.msra.mxu0 %v1587_v16  ;;  %v2501_v15 = vld [vmem:[#allocation29_spill] sm:$0xff]  ;;  %v2502_v16 = vld [vmem:[#allocation30_spill] sm:$0xff] }
  0xaf   : > { %570 = vmatpush.msra.mxu1 %v1589_v17  ;;  %590 = vmatpush.msra.mxu2 %v1593_v18  ;;  %v2503_v17 = vld [vmem:[#allocation31_spill] sm:$0xff]  ;;  %v2504_v18 = vld [vmem:[#allocation32_spill] sm:$0xff] }
  0xb0   : > { %610 = vmatpush.msra.mxu3 %v1595_v19  ;;  %551 = vmatpush.msra.mxu0 %v1599_v20  ;;  %v2505_v19 = vld [vmem:[#allocation33_spill] sm:$0xff]  ;;  %v2506_v20 = vld [vmem:[#allocation34_spill] sm:$0xff] }
  0xb1   : > { %571 = vmatpush.msra.mxu1 %v1601_v21  ;;  %591 = vmatpush.msra.mxu2 %v1605_v22  ;;  %v2507_v21 = vld [vmem:[#allocation35_spill] sm:$0xff]  ;;  %v2508_v22 = vld [vmem:[#allocation36_spill] sm:$0xff] }
  0xb2   : > { %611 = vmatpush.msra.mxu3 %v1607_v23  ;;  %552 = vmatpush.msra.mxu0 %v1611_v24  ;;  %v2509_v23 = vld [vmem:[#allocation37_spill] sm:$0xff]  ;;  %v2510_v24 = vld [vmem:[#allocation38_spill] sm:$0xff] }
  0xb3   : > { %572 = vmatpush.msra.mxu1 %v1613_v25  ;;  %592 = vmatpush.msra.mxu2 %v1617_v26  ;;  %v2511_v25 = vld [vmem:[#allocation39_spill] sm:$0xff]  ;;  %v2512_v26 = vld [vmem:[#allocation40_spill] sm:$0xff] }
  0xb4   : > { %612 = vmatpush.msra.mxu3 %v1619_v27  ;;  %553 = vmatpush.msra.mxu0 %v1623_v28  ;;  %v2513_v27 = vld [vmem:[#allocation41_spill] sm:$0xff]  ;;  %v2514_v28 = vld [vmem:[#allocation42_spill] sm:$0xff] }
  0xb5   : > { %573 = vmatpush.msra.mxu1 %v1625_v29  ;;  %593 = vmatpush.msra.mxu2 %v1629_v30  ;;  %v2515_v29 = vld [vmem:[#allocation43_spill] sm:$0xff]  ;;  %v2516_v30 = vld [vmem:[#allocation44_spill] sm:$0xff] }
  0xb6   : > { %613 = vmatpush.msra.mxu3 %v1631_v31  ;;  %554 = vmatpush.msra.mxu0 %v1635_v32  ;;  %v2517_v31 = vld [vmem:[#allocation45_spill] sm:$0xff]  ;;  %v2518_v32 = vld [vmem:[#allocation46_spill] sm:$0xff] }
  0xb7   : > { %574 = vmatpush.msra.mxu1 %v1637_v33  ;;  %594 = vmatpush.msra.mxu2 %v1641_v34  ;;  %v2519_v33 = vld [vmem:[#allocation47_spill] sm:$0xff]  ;;  %v2520_v34 = vld [vmem:[#allocation48_spill] sm:$0xff] }
  0xb8   : > { %614 = vmatpush.msra.mxu3 %v1643_v35  ;;  %555 = vmatpush.msra.mxu0 %v1647_v36  ;;  %v2521_v35 = vld [vmem:[#allocation49_spill] sm:$0xff]  ;;  %v2522_v36 = vld [vmem:[#allocation50_spill] sm:$0xff] }
  0xb9   : > { %575 = vmatpush.msra.mxu1 %v1649_v37  ;;  %595 = vmatpush.msra.mxu2 %v1653_v38  ;;  %v2523_v37 = vld [vmem:[#allocation51_spill] sm:$0xff]  ;;  %v2524_v38 = vld [vmem:[#allocation52_spill] sm:$0xff] }
  0xba   : > { %615 = vmatpush.msra.mxu3 %v1655_v39  ;;  %556 = vmatpush.msra.mxu0 %v1659_v40  ;;  %v2525_v39 = vld [vmem:[#allocation53_spill] sm:$0xff]  ;;  %v2526_v40 = vld [vmem:[#allocation54_spill] sm:$0xff] }
  0xbb   : > { %576 = vmatpush.msra.mxu1 %v1661_v41  ;;  %596 = vmatpush.msra.mxu2 %v1665_v42  ;;  %v2527_v41 = vld [vmem:[#allocation55_spill] sm:$0xff]  ;;  %v2528_v42 = vld [vmem:[#allocation56_spill] sm:$0xff] }
  0xbc   : > { %616 = vmatpush.msra.mxu3 %v1667_v43  ;;  %557 = vmatpush.msra.mxu0 %v1671_v44  ;;  %v2529_v43 = vld [vmem:[#allocation57_spill] sm:$0xff]  ;;  %v2530_v44 = vld [vmem:[#allocation58_spill] sm:$0xff] }
  0xbd   : > { %577 = vmatpush.msra.mxu1 %v1673_v45  ;;  %597 = vmatpush.msra.mxu2 %v1677_v46  ;;  %v2531_v45 = vld [vmem:[#allocation59_spill] sm:$0xff]  ;;  %v2532_v46 = vld [vmem:[#allocation60_spill] sm:$0xff] }
  0xbe   : > { %617 = vmatpush.msra.mxu3 %v1679_v47  ;;  %558 = vmatpush.msra.mxu0 %v1683_v48  ;;  %v2533_v47 = vld [vmem:[#allocation61_spill] sm:$0xff]  ;;  %v2534_v48 = vld [vmem:[#allocation62_spill] sm:$0xff] }
  0xbf   : > { %578 = vmatpush.msra.mxu1 %v1685_v49  ;;  %598 = vmatpush.msra.mxu2 %v1689_v50  ;;  %v2535_v49 = vld [vmem:[#allocation63_spill] sm:$0xff]  ;;  %v2536_v50 = vld [vmem:[#allocation64_spill] sm:$0xff] }
  0xc0   : > { %618 = vmatpush.msra.mxu3 %v2486_v0  ;;  %559 = vmatpush.msra.mxu0 %v2487_v1  ;;  %v2539_v0 = vld [vmem:[#allocation67_spill] sm:$0xff]  ;;  %v2540_v1 = vld [vmem:[#allocation68_spill] sm:$0xff] }
  0xc1   : > { %579 = vmatpush.msra.mxu1 %v2488_v2  ;;  %599 = vmatpush.msra.mxu2 %v2489_v3  ;;  %v2541_v2 = vld [vmem:[#allocation69_spill] sm:$0xff]  ;;  %v2542_v3 = vld [vmem:[#allocation70_spill] sm:$0xff] }
  0xc2   : > { %619 = vmatpush.msra.mxu3 %v2490_v4  ;;  %560 = vmatpush.msra.mxu0 %v2491_v5  ;;  %v542_v4 = vld.sshfl [vmem:[#allocation1] sm:$0xff pattern:$0x75316420]  ;;  %v543_v5 = vld.sshfl [vmem:[#allocation1 + $0x8] sm:$0xff pattern:$0x75316420] }
  0xc3   : > { %580 = vmatpush.msra.mxu1 %v2492_v6  ;;  %600 = vmatpush.msra.mxu2 %v2493_v7  ;;  %v2543_v6 = vld [vmem:[#allocation71_spill] sm:$0xff]  ;;  %v2544_v7 = vld [vmem:[#allocation72_spill] sm:$0xff] }
  0xc4   : > { %620 = vmatpush.msra.mxu3 %v2494_v8  ;;  %561 = vmatpush.msra.mxu0 %v2495_v9  ;;  %v2545_v8 = vld [vmem:[#allocation73_spill] sm:$0xff]  ;;  %v2546_v9 = vld [vmem:[#allocation74_spill] sm:$0xff] }
  0xc5   : > { %581 = vmatpush.msra.mxu1 %v2496_v10  ;;  %601 = vmatpush.msra.mxu2 %v2497_v11  ;;  %v2547_v10 = vld [vmem:[#allocation75_spill] sm:$0xff]  ;;  %v2548_v11 = vld [vmem:[#allocation76_spill] sm:$0xff] }
  0xc6   : > { %621 = vmatpush.msra.mxu3 %v2498_v12  ;;  %626 = vmatpush.msrb.mxu0 %v2499_v13  ;;  %v2549_v12 = vld [vmem:[#allocation77_spill] sm:$0xff]  ;;  %v2550_v13 = vld [vmem:[#allocation78_spill] sm:$0xff] }
  0xc7   : > { %646 = vmatpush.msrb.mxu1 %v2500_v14  ;;  %666 = vmatpush.msrb.mxu2 %v2501_v15  ;;  %v2551_v14 = vld [vmem:[#allocation79_spill] sm:$0xff] }
  0xc8   : > { %686 = vmatpush.msrb.mxu3 %v2502_v16  ;;  %627 = vmatpush.msrb.mxu0 %v2503_v17 }
  0xc9   : > { %647 = vmatpush.msrb.mxu1 %v2504_v18  ;;  %667 = vmatpush.msrb.mxu2 %v2505_v19 }
  0xca   : > { %687 = vmatpush.msrb.mxu3 %v2506_v20  ;;  %628 = vmatpush.msrb.mxu0 %v2507_v21 }
  0xcb   : > { %648 = vmatpush.msrb.mxu1 %v2508_v22  ;;  %668 = vmatpush.msrb.mxu2 %v2509_v23 }
  0xcc   : > { %688 = vmatpush.msrb.mxu3 %v2510_v24  ;;  %629 = vmatpush.msrb.mxu0 %v2511_v25 }
  0xcd   : > { %649 = vmatpush.msrb.mxu1 %v2512_v26  ;;  %669 = vmatpush.msrb.mxu2 %v2513_v27 }
  0xce   : > { %689 = vmatpush.msrb.mxu3 %v2514_v28  ;;  %630 = vmatpush.msrb.mxu0 %v2515_v29 }
  0xcf   : > { %650 = vmatpush.msrb.mxu1 %v2516_v30  ;;  %670 = vmatpush.msrb.mxu2 %v2517_v31 }
  0xd0   : > { %690 = vmatpush.msrb.mxu3 %v2518_v32  ;;  %631 = vmatpush.msrb.mxu0 %v2519_v33 }
  0xd1   : > { %651 = vmatpush.msrb.mxu1 %v2520_v34  ;;  %671 = vmatpush.msrb.mxu2 %v2521_v35 }
  0xd2   : > { %691 = vmatpush.msrb.mxu3 %v2522_v36  ;;  %632 = vmatpush.msrb.mxu0 %v2523_v37 }
  0xd3   : > { %652 = vmatpush.msrb.mxu1 %v2524_v38  ;;  %672 = vmatpush.msrb.mxu2 %v2525_v39 }
  0xd4   : > { %692 = vmatpush.msrb.mxu3 %v2526_v40  ;;  %633 = vmatpush.msrb.mxu0 %v2527_v41 }
  0xd5   : > { %653 = vmatpush.msrb.mxu1 %v2528_v42  ;;  %673 = vmatpush.msrb.mxu2 %v2529_v43 }
  0xd6   : > { %693 = vmatpush.msrb.mxu3 %v2530_v44  ;;  %634 = vmatpush.msrb.mxu0 %v2531_v45 }
  0xd7   : > { %654 = vmatpush.msrb.mxu1 %v2532_v46  ;;  %674 = vmatpush.msrb.mxu2 %v2533_v47 }
  0xd8   : > { %694 = vmatpush.msrb.mxu3 %v2534_v48  ;;  %635 = vmatpush.msrb.mxu0 %v2535_v49 }
  0xd9   : > { %655 = vmatpush.msrb.mxu1 %v2536_v50  ;;  %675 = vmatpush.msrb.mxu2 %v2537_v53 }
  0xda   : > { %695 = vmatpush.msrb.mxu3 %v2538_v54  ;;  %636 = vmatpush.msrb.mxu0 %v2539_v0 }
  0xdb   : > { %656 = vmatpush.msrb.mxu1 %v2540_v1  ;;  %676 = vmatpush.msrb.mxu2 %v2541_v2 }
  0xdc   : > { %696 = vmatpush.msrb.mxu3 %v2542_v3  ;;  %637 = vmatpush.msrb.mxu0 %v2543_v6 }
  0xdd   : > { %657 = vmatpush.msrb.mxu1 %v2544_v7  ;;  %677 = vmatpush.msrb.mxu2 %v2545_v8 }
  0xde   : > { %697 = vmatpush.msrb.mxu3 %v2546_v9  ;;  %562 = vmatmul.f32.vlgmr.msra.gmra.mxu0 %v542_v4 }
  0xdf   : > { %582 = vmatmul.f32.vlgmr.msra.gmra.mxu1 %v543_v5  ;;  %602 = vmatmul.f32.vlgmr.msra.gmra.mxu2 %v542_v4 }
  0xe0   : > { %622 = vmatmul.f32.vlgmr.msra.gmra.mxu3 %v543_v5  ;;  %638 = vmatpush.msrb.mxu0 %v2547_v10 }
  0xe1   : > { %658 = vmatpush.msrb.mxu1 %v2548_v11  ;;  %678 = vmatpush.msrb.mxu2 %v2549_v12 }
  0xe2   : > { %698 = vmatpush.msrb.mxu3 %v2550_v13  ;;  %639 = vmatpush.msrb.mxu0 %v2551_v14 }
  0xe3   : > { %659 = vmatpush.msrb.mxu1 %v1899_v57  ;;  %679 = vmatpush.msrb.mxu2 %v1903_v55 }
  0xe4   : > { %699 = vmatpush.msrb.mxu3 %v1905_v61  ;;  %640 = vmatpush.msrb.mxu0 %v1909_v58 }
  0xe5   : > { %660 = vmatpush.msrb.mxu1 %v1911_v52  ;;  %680 = vmatpush.msrb.mxu2 %v1915_v59 }
  0xe6   : > { %700 = vmatpush.msrb.mxu3 %v1917_v60  ;;  %641 = vmatpush.msrb.mxu0 %v1921_v63 }
  0xe7   : > { %661 = vmatpush.msrb.mxu1 %v1923_v62  ;;  %681 = vmatpush.msrb.mxu2 %v1927_v51 }
  0xe8   : > { %701 = vmatpush.msrb.mxu3 %v1929_v56  ;;  %642 = vmatmul.f32.vlgmr.msrb.gmra.mxu0 %v542_v4 }
  0xe9   : > { %662 = vmatmul.f32.vlgmr.msrb.gmra.mxu1 %v543_v5  ;;  %682 = vmatmul.f32.vlgmr.msrb.gmra.mxu2 %v542_v4 }
  0xea   : > { %702 = vmatmul.f32.vlgmr.msrb.gmra.mxu3 %v543_v5 }
 0x105   : > { %v396_v55 = vpop.f32.mrf.mxu0 }
 0x106   : > { %v416_v57 = vpop.f32.mrf.mxu1 }
 0x107   : > { %v2069_v52 = vadd.f32 %v416_v57, %v396_v55 }
 0x109   : > { %1185 = vrcp.f32 %v2069_v52  ;;  %v706_v30 = vmul.f32 %v2069_v52, %v2069_v52 }
 0x10b   : > { %v436_v61 = vpop.f32.mrf.mxu2 }
 0x10e   : > { %v456_v58 = vpop.f32.mrf.mxu3 }
 0x10f   : > { %v2071_v59 = vadd.f32 %v456_v58, %v436_v61  ;;  %v1186_v15 = vpop.eup %1185 }
 0x111   : > { %1187 = vrcp.f32 %v2071_v59  ;;  %v707_v40 = vmul.f32 %v2071_v59, %v2071_v59 }
 0x117   : > { %v1188_v17 = vpop.eup %1187 }
 0x120   : > { %v476_v60 = vpop.f32.mrf.mxu0 }
 0x121   : > { %v496_v51 = vpop.f32.mrf.mxu1 }
 0x122   : > { %v2075_v63 = vadd.f32 %v496_v51, %v476_v60 }
 0x124   : > { %v2080_v18 = vmul.f32 %v1186_v15, %v2075_v63  ;;  %v708_v31 = vmul.f32 %v2075_v63, %v2075_v63 }
 0x126   : > { %v2086_v20 = vand.u32 2147483647, %v2080_v18  ;;  %v2102_v36 = vadd.f32 %v708_v31, %v706_v30 }
 0x128   : > { %v516_v62 = vpop.f32.mrf.mxu2  ;;  %v798_v22 = vadd.f32 1.0, %v2086_v20  ;;  %v794_v24 = vmax.f32 %v2086_v20, 1e-30  ;;  %v1096_v26 = vadd.f32 -1.0, %v2086_v20  ;;  %vm792_vm0 = vcmp.gt.f32.partialorder %v2086_v20, 0.41421357 }
 0x129   : > { %v536_v56 = vpop.f32.mrf.mxu3  ;;  %vm790_vm1 = vcmp.gt.f32.partialorder %v2086_v20, 2.4142137  ;;  %vm719_vm4 = vcmp.eq.f32.partialorder %v2102_v36, inf  ;;  %vm721_vm6 = vcmp.eq.f32.partialorder %v2102_v36, 0.0 }
 0x12a   : > { %v2077_v16 = vadd.f32 %v536_v56, %v516_v62  ;;  %1189 = vrcp.f32 %v798_v22 }
 0x12c   : > { %v2083_v19 = vmul.f32 %v1188_v17, %v2077_v16  ;;  %v709_v41 = vmul.f32 %v2077_v16, %v2077_v16 }
 0x12e   : > { %v2089_v21 = vand.u32 2147483647, %v2083_v19  ;;  %v2126_v45 = vadd.f32 %v709_v41, %v707_v40 }
 0x130   : > { %v799_v23 = vadd.f32 1.0, %v2089_v21  ;;  %v795_v25 = vmax.f32 %v2089_v21, 1e-30  ;;  %v1190_v27 = vpop.eup %1189  ;;  %v1097_v28 = vadd.f32 -1.0, %v2089_v21  ;;  %vm793_vm2 = vcmp.gt.f32.partialorder %v2089_v21, 0.41421357 }
 0x131   : > { %v806_v33 = vmul.f32 %v1190_v27, %v1096_v26  ;;  %vm791_vm3 = vcmp.gt.f32.partialorder %v2089_v21, 2.4142137  ;;  %vm731_vm12 = vcmp.eq.f32.partialorder %v2126_v45, inf  ;;  %vm733_vm13 = vcmp.eq.f32.partialorder %v2126_v45, 0.0 }
 0x132   : > { %1191 = vrcp.f32 %v799_v23 }
 0x133   : > { %1193 = vrcp.f32 %v794_v24  ;;  %v808_v39 = vsel %vm792_vm0, %v806_v33, %v2086_v20 }
 0x134   : > { %1195 = vrcp.f32 %v795_v25 }
 0x135   : > { %1197 = vrsqrt.f32 %v2102_v36 }
 0x136   : > { %1199 = vrsqrt.f32 %v2126_v45 }
 0x138   : > { %v1192_v29 = vpop.eup %1191 }
 0x139   : > { %v1194_v32 = vpop.eup %1193  ;;  %v807_v35 = vmul.f32 %v1192_v29, %v1097_v28 }
 0x13a   : > { %v1196_v34 = vpop.eup %1195  ;;  %v802_v37 = vsub.f32 0.0, %v1194_v32 }
 0x13b   : > { %v803_v38 = vsub.f32 0.0, %v1196_v34  ;;  %v809_v42 = vsel %vm793_vm2, %v807_v35, %v2089_v21  ;;  %v1198_v53 = vpop.eup %1197 }
 0x13c   : > { %v2119_v43 = vsel %vm790_vm1, %v802_v37, %v808_v39  ;;  %v713_v3 = vmul.f32 %v1198_v53, %v2102_v36  ;;  %v1200_v6 = vpop.eup %1199 }
 0x13d   : > { %v2124_v44 = vsel %vm791_vm3, %v803_v38, %v809_v42  ;;  %v2130_v48 = vmul.f32 %v2119_v43, %v2119_v43  ;;  %v725_v13 = vmul.f32 %v1200_v6, %v2126_v45 }
 0x13e   : > { %v2136_v50 = vmul.f32 %v2124_v44, %v2124_v44  ;;  %v714_v12 = vmul.f32 %v1198_v53, %v713_v3 }
 0x13f   : > { %v818_v54 = vmul.f32 0.080537446, %v2130_v48  ;;  %v726_v22 = vmul.f32 %v1200_v6, %v725_v13 }
 0x140   : > { %v819_v0 = vmul.f32 0.080537446, %v2136_v50  ;;  %v715_v51 = vmul.f32 0.5, %v714_v12 }
 0x141   : > { %v1098_v5 = vadd.f32 -0.13877685, %v818_v54  ;;  %v727_v32 = vmul.f32 0.5, %v726_v22 }
 0x142   : > { %v1099_v7 = vadd.f32 -0.13877685, %v819_v0  ;;  %v716_v27 = vsub.f32 1.5, %v715_v51  ;;  %v722_v51 = vand.u32 2147483648, %v2102_v36 }
 0x143   : > { %v822_v14 = vmul.f32 %v1098_v5, %v2130_v48  ;;  %v728_v41 = vsub.f32 1.5, %v727_v32  ;;  %v1386_v5 = vmov 0.0  }
 0x144   : > { %v823_v61 = vmul.f32 %v1099_v7, %v2136_v50  ;;  %v717_v39 = vmul.f32 %v1198_v53, %v716_v27  ;;  %v812_v53 = vsel %vm792_vm0, 0.7853982, %v1386_v5  ;;  %vm770_vm0 = vcmask 1043456  }
 0x145   : > { %v824_v23 = vadd.f32 0.19977711, %v822_v14  ;;  %v729_v12 = vmul.f32 %v1200_v6, %v728_v41 }
 0x146   : > { %v825_v24 = vadd.f32 0.19977711, %v823_v61 }
 0x147   : > { %v826_v33 = vmul.f32 %v824_v23, %v2130_v48 }
 0x148   : > { %v827_v34 = vmul.f32 %v825_v24, %v2136_v50  ;;  %v730_v24 = vmul.f32 %v729_v12, %v2126_v45 }
 0x149   : > { %v1100_v42 = vadd.f32 -0.3333295, %v826_v33 }
 0x14b   : > { %v830_v13 = vmul.f32 %v1100_v42, %v2130_v48  ;;  %v814_v48 = vsel %vm790_vm1, 1.5707964, %v812_v53  ;;  %vm838_vm1 = vcmp.lt.f32.partialorder %v2080_v18, 0.0 }
 0x14d   : > { %v832_v20 = vmul.f32 %v830_v13, %v2119_v43 }
 0x15b   : > { %v563_v46 = vpop.f32.mrf.mxu0 }
 0x15c   : > { %v583_v47 = vpop.f32.mrf.mxu1 }
 0x15d   : > { %v2132_v49 = vadd.f32 %v583_v47, %v563_v46  ;;  %v1101_v46 = vadd.f32 -0.3333295, %v827_v34 }
 0x15f   : > { %1201 = vrcp.f32 %v2132_v49  ;;  %v736_v55 = vmul.f32 %v2132_v49, %v2132_v49  ;;  %v831_v14 = vmul.f32 %v1101_v46, %v2136_v50  ;;  %v834_v46 = vadd.f32 %v832_v20, %v2119_v43 }
 0x160   : > { %v813_v43 = vsel %vm793_vm2, 0.7853982, %v1386_v5  ;;  %vm846_vm2 = vcmp.lt.f32.partialorder %v2069_v52, 0.0 }
 0x161   : > { %v833_v27 = vmul.f32 %v831_v14, %v2124_v44 }
 0x162   : > { %v603_v1 = vpop.f32.mrf.mxu2 }
 0x163   : > { %v623_v2 = vpop.f32.mrf.mxu3  ;;  %v835_v53 = vadd.f32 %v833_v27, %v2124_v44  ;;  %v815_v44 = vsel %vm791_vm3, 1.5707964, %v813_v43  ;;  %vm839_vm3 = vcmp.lt.f32.partialorder %v2083_v19, 0.0 }
 0x164   : > { %v2143_v4 = vadd.f32 %v623_v2, %v603_v1 }
 0x165   : > { %v1202_v8 = vpop.eup %1201  ;;  %v643_v9 = vpop.f32.mrf.mxu0 }
 0x166   : > { %v663_v10 = vpop.f32.mrf.mxu1  ;;  %1203 = vrcp.f32 %v2143_v4  ;;  %v737_v29 = vmul.f32 %v2143_v4, %v2143_v4 }
 0x167   : > { %v2146_v11 = vadd.f32 %v663_v10, %v643_v9 }
 0x169   : > { %v738_v57 = vmul.f32 %v2146_v11, %v2146_v11  ;;  %v2156_v58 = vmul.f32 %v1202_v8, %v2146_v11  ;;  %v718_v8 = vmul.f32 %v717_v39, %v2102_v36 }
 0x16b   : > { %v2158_v60 = vadd.f32 %v738_v57, %v736_v55  ;;  %v2161_v62 = vand.u32 2147483647, %v2156_v58 }
 0x16c   : > { %v1204_v56 = vpop.eup %1203  ;;  %v683_v15 = vpop.f32.mrf.mxu2 }
 0x16d   : > { %v703_v17 = vpop.f32.mrf.mxu3  ;;  %1205 = vrsqrt.f32 %v2158_v60  ;;  %v878_v26 = vmax.f32 %v2161_v62, 1e-30  ;;  %v882_v28 = vadd.f32 1.0, %v2161_v62  ;;  %v1104_v2 = vadd.f32 -1.0, %v2161_v62 }
 0x16e   : > { %v2164_v25 = vadd.f32 %v703_v17, %v683_v15  ;;  %vm876_vm5 = vcmp.gt.f32.partialorder %v2161_v62, 0.41421357  ;;  %vm874_vm7 = vcmp.gt.f32.partialorder %v2161_v62, 2.4142137  ;;  %vm749_vm8 = vcmp.eq.f32.partialorder %v2158_v60, inf }
 0x16f   : > { %1207 = vrcp.f32 %v878_v26  ;;  %v752_v33 = vand.u32 2147483648, %v2158_v60  ;;  %vm751_vm11 = vcmp.eq.f32.partialorder %v2158_v60, 0.0  ;;  %v896_v27 = vsel %vm876_vm5, 0.7853982, %v1386_v5 }
 0x170   : > { %v739_v30 = vmul.f32 %v2164_v25, %v2164_v25  ;;  %v2173_v31 = vmul.f32 %v1204_v56, %v2164_v25  ;;  %1209 = vrcp.f32 %v882_v28  ;;  %v720_v56 = vsel %vm719_vm4, %v2102_v36, %v718_v8 }
 0x171   : > { %v836_v36 = vadd.f32 %v834_v46, %v814_v48  ;;  %vm848_vm4 = vcmp.ge.f32.partialorder %v2075_v63, 0.0 }
 0x172   : > { %v2177_v35 = vadd.f32 %v739_v30, %v737_v29  ;;  %v2180_v37 = vand.u32 2147483647, %v2173_v31 }
 0x173   : > { %v1206_v38 = vpop.eup %1205 }
 0x174   : > { %v743_v40 = vmul.f32 %v1206_v38, %v2158_v60  ;;  %1211 = vrsqrt.f32 %v2177_v35  ;;  %v883_v47 = vadd.f32 1.0, %v2180_v37  ;;  %v879_v1 = vmax.f32 %v2180_v37, 1e-30 }
 0x175   : > { %v1208_v54 = vpop.eup %1207  ;;  %v1105_v17 = vadd.f32 -1.0, %v2180_v37  ;;  %vm877_vm9 = vcmp.gt.f32.partialorder %v2180_v37, 0.41421357  ;;  %vm875_vm10 = vcmp.gt.f32.partialorder %v2180_v37, 2.4142137  ;;  %vm761_vm14 = vcmp.eq.f32.partialorder %v2177_v35, inf }
 0x176   : > { %v744_v0 = vmul.f32 %v1206_v38, %v743_v40  ;;  %v1210_v3 = vpop.eup %1209  ;;  %1213 = vrcp.f32 %v883_v47  ;;  %v886_v7 = vsub.f32 0.0, %v1208_v54  ;;  %v764_v13 = vand.u32 2147483648, %v2177_v35 }
 0x177   : > { %1215 = vrcp.f32 %v879_v1  ;;  %v890_v10 = vmul.f32 %v1210_v3, %v1104_v2  ;;  %v723_v2 = vsel %vm721_vm6, %v722_v51, %v720_v56  ;;  %v732_v3 = vsel %vm731_vm12, %v2126_v45, %v730_v24 }
 0x178   : > { %v745_v9 = vmul.f32 0.5, %v744_v0  ;;  %vm763_vm15 = vcmp.eq.f32.partialorder %v2177_v35, 0.0  ;;  %vm849_vm6 = vcmp.ge.f32.partialorder %v2077_v16, 0.0  ;;  %vm942_vm12 = vcmp.lt.f32.partialorder %v2146_v11, 0.0 }
 0x179   : > { %v892_v61 = vsel %vm876_vm5, %v890_v10, %v2161_v62  ;;  %vm858_vm5 = vcmp.lt.f32.partialorder %v2075_v63, 0.0  ;;  %v897_v62 = vsel %vm877_vm9, 0.7853982, %v1386_v5 }
 0x17a   : > { %v1212_v55 = vpop.eup %1211  ;;  %v746_v57 = vsub.f32 1.5, %v745_v9  ;;  %v2206_v50 = vsel %vm874_vm7, %v886_v7, %v892_v61  ;;  %v734_v9 = vand.u32 2147483648, %v2126_v45  ;;  %v837_v45 = vadd.f32 %v835_v53, %v815_v44 }
 0x17b   : > { %v755_v6 = vmul.f32 %v1212_v55, %v2177_v35  ;;  %v900_v22 = vmul.f32 %v2206_v50, %v2206_v50  ;;  %v860_v19 = vsel %vm858_vm5, -1.5707964, %v1386_v5  ;;  %v899_v43 = vsel %vm875_vm10, 1.5707964, %v897_v62 }
 0x17c   : > { %v747_v15 = vmul.f32 %v1206_v38, %v746_v57  ;;  %v1214_v23 = vpop.eup %1213  ;;  %v735_v57 = vsel %vm733_vm13, %v734_v9, %v732_v3  ;;  %v841_v20 = vsub.f32 0.0, %v837_v45  ;;  %vm922_vm13 = vcmp.lt.f32.partialorder %v2156_v58, 0.0 }
 0x17d   : > { %v756_v26 = vmul.f32 %v1212_v55, %v755_v6  ;;  %v1216_v28 = vpop.eup %1215  ;;  %v891_v30 = vmul.f32 %v1214_v23, %v1105_v17  ;;  %v902_v32 = vmul.f32 0.080537446, %v900_v22  ;;  %v840_v17 = vsub.f32 0.0, %v836_v36 }
 0x17e   : > { %v748_v29 = vmul.f32 %v747_v15, %v2158_v60  ;;  %v887_v38 = vsub.f32 0.0, %v1216_v28  ;;  %vm847_vm5 = vcmp.lt.f32.partialorder %v2071_v59, 0.0 }
 0x17f   : > { %v757_v34 = vmul.f32 0.5, %v756_v26  ;;  %v893_v40 = vsel %vm877_vm9, %v891_v30, %v2180_v37  ;;  %v1106_v41 = vadd.f32 -0.13877685, %v902_v32  ;;  %v842_v32 = vsel %vm838_vm1, %v840_v17, %v836_v36 }
 0x180   : > { %v750_v39 = vsel %vm749_vm8, %v2158_v60, %v748_v29  ;;  %v2230_v47 = vsel %vm875_vm10, %v887_v38, %v893_v40  ;;  %v843_v38 = vsel %vm839_vm3, %v841_v20, %v837_v45  ;;  %vm856_vm8 = vcmp.gt.f32.partialorder %v2075_v63, 0.0 }
 0x181   : > { %v758_v42 = vsub.f32 1.5, %v757_v34  ;;  %v753_v54 = vsel %vm751_vm11, %v752_v33, %v750_v39  ;;  %v901_v0 = vmul.f32 %v2230_v47, %v2230_v47  ;;  %v906_v1 = vmul.f32 %v1106_v41, %v900_v22 }
 0x182   : > { %v766_v12 = vsub.f32 %v723_v2, %v753_v54  ;;  %v898_v34 = vsel %vm874_vm7, 1.5707964, %v896_v27  ;;  %v1102_v40 = vadd.f32 -3.1415927, %v842_v32  ;;  %vm857_vm11 = vcmp.gt.f32.partialorder %v2077_v16, 0.0 }
 0x183   : > { %v759_v60 = vmul.f32 %v1212_v55, %v758_v42  ;;  %v903_v7 = vmul.f32 0.080537446, %v901_v0  ;;  %v908_v8 = vadd.f32 0.19977711, %v906_v1  ;;  %v851_v46 = vadd.f32 3.1415927, %v843_v38 }
 0x184   : > { %v768_v48 = vmul.f32 %v766_v12, %v766_v12  ;;  %v1103_v54 = vadd.f32 -3.1415927, %v843_v38  ;;  %vm859_vm7 = vcmp.lt.f32.partialorder %v2077_v16, 0.0  ;;  %v944_v2 = vsel %vm942_vm12, -1.5707964, %v1386_v5 }
 0x185   : > { %v760_v10 = vmul.f32 %v759_v60, %v2177_v35  ;;  %v1107_v14 = vadd.f32 -0.13877685, %v903_v7  ;;  %v910_v55 = vmul.f32 %v908_v8, %v900_v22  ;;  %v861_v7 = vsel %vm859_vm7, -1.5707964, %v1386_v5 }
 0x186   : > { %v771_v28 = vsel %vm770_vm0, %v768_v48, 0.0  ;;  %v862_v58 = vsel %vm856_vm8, 1.5707964, %v860_v19  ;;  %vm932_vm9 = vcmp.ge.f32.partialorder %v2146_v11, 0.0  ;;  %vm943_vm1 = vcmp.lt.f32.partialorder %v2164_v25, 0.0 }
 0x187   : > { %v762_v61 = vsel %vm761_vm14, %v2177_v35, %v760_v10  ;;  %v907_v6 = vmul.f32 %v1107_v14, %v901_v0  ;;  %v1108_v56 = vadd.f32 -0.3333295, %v910_v55  ;;  %vm940_vm14 = vcmp.gt.f32.partialorder %v2146_v11, 0.0 }
 0x188   : > { %v765_v51 = vsel %vm763_vm15, %v764_v13, %v762_v61  ;;  %vm930_vm15 = vcmp.lt.f32.partialorder %v2132_v49, 0.0  ;;  %v946_v9 = vsel %vm940_vm14, 1.5707964, %v944_v2  ;;  %vm928_vm10 = vcmp.gt.f32.partialorder %v2132_v49, 0.0 }
 0x189   : > { %v767_v15 = vsub.f32 %v735_v57, %v765_v51  ;;  %v909_v23 = vadd.f32 0.19977711, %v907_v6  ;;  %v914_v24 = vmul.f32 %v1108_v56, %v900_v22  ;;  %vm844_vm3 = vcmp.gt.f32.partialorder %v2069_v52, 0.0 }
 0x18a   : > { %v855_v63 = vsel %vm849_vm6, %v851_v46, %v1103_v54  ;;  %vm941_vm8 = vcmp.gt.f32.partialorder %v2164_v25, 0.0  ;;  %v945_v13 = vsel %vm943_vm1, -1.5707964, %v1386_v5  ;;  %v863_v14 = vsel %vm857_vm11, 1.5707964, %v861_v7 }
 0x18b   : > { %v769_v26 = vmul.f32 %v767_v15, %v767_v15  ;;  %v911_v35 = vmul.f32 %v909_v23, %v901_v0  ;;  %v916_v21 = vmul.f32 %v914_v24, %v2206_v50  ;;  %v865_v52 = vsel %vm847_vm5, %v855_v63, %v863_v14 }
 0x18c   : > { %vm931_vm6 = vcmp.lt.f32.partialorder %v2143_v4, 0.0  ;;  %v947_v44 = vsel %vm941_vm8, 1.5707964, %v945_v13  ;;  %vm845_vm12 = vcmp.gt.f32.partialorder %v2071_v59, 0.0  ;;  %vm929_vm7 = vcmp.gt.f32.partialorder %v2143_v4, 0.0 }
 0x18d   : > { %v772_v29 = vsel %vm770_vm0, %v769_v26, 0.0  ;;  %v1109_v33 = vadd.f32 -0.3333295, %v911_v35  ;;  %v918_v22 = vadd.f32 %v916_v21, %v2206_v50  ;;  %v850_v50 = vadd.f32 3.1415927, %v842_v32 }
 0x18e   : > { %v773_v30 = vadd.f32 %v772_v29, %v771_v28  ;;  %v867_v5 = vsel %vm845_vm12, %v843_v38, %v865_v52 }
 0x18f   : > { %v915_v18 = vmul.f32 %v1109_v33, %v901_v0  ;;  %v920_v39 = vadd.f32 %v918_v22, %v898_v34  ;;  %v854_v60 = vsel %vm848_vm4, %v850_v50, %v1102_v40  ;;  %vm923_vm4 = vcmp.lt.f32.partialorder %v2173_v31, 0.0 }
 0x190   : > { %774 = vadd.xlane.f32.xlu0 %v773_v30  ;;  %v864_v37 = vsel %vm846_vm2, %v854_v60, %v862_v58  ;;  %vm933_vm2 = vcmp.ge.f32.partialorder %v2164_v25, 0.0 }
 0x191   : > { %v917_v41 = vmul.f32 %v915_v18, %v2230_v47  ;;  %v924_v42 = vsub.f32 0.0, %v920_v39  ;;  %v866_v49 = vsel %vm844_vm3, %v842_v32, %v864_v37 }
 0x193   : > { %v919_v0 = vadd.f32 %v917_v41, %v2230_v47  ;;  %v926_v1 = vsel %vm922_vm13, %v924_v42, %v920_v39 }
 0x194   : > { %v934_v3 = vadd.f32 3.1415927, %v926_v1  ;;  %v1110_v53 = vadd.f32 -3.1415927, %v926_v1 }
 0x195   : > { %v921_v8 = vadd.f32 %v919_v0, %v899_v43 }
 0x196   : > { %v938_v47 = vsel %vm932_vm9, %v934_v3, %v1110_v53 }
 0x197   : > { %v925_v10 = vsub.f32 0.0, %v921_v8  ;;  %v948_v12 = vsel %vm930_vm15, %v938_v47, %v946_v9 }
 0x198   : > { %v950_v11 = vsel %vm928_vm10, %v926_v1, %v948_v12 }
 0x199   : > { %v927_v36 = vsel %vm923_vm4, %v925_v10, %v921_v8  ;;  %v952_v61 = vsub.f32 %v866_v49, %v950_v11 }
 0x19a   : > { %v935_v55 = vadd.f32 3.1415927, %v927_v36  ;;  %v1111_v57 = vadd.f32 -3.1415927, %v927_v36 }
 0x19b   : > { %v954_v6 = vmul.f32 %v952_v61, %v952_v61 }
 0x19c   : > { %v939_v31 = vsel %vm933_vm2, %v935_v55, %v1111_v57 }
 0x19d   : > { %v949_v51 = vsel %vm931_vm6, %v939_v31, %v947_v44  ;;  %v956_v15 = vsel %vm770_vm0, %v954_v6, 0.0 }
 0x19e   : > { %v951_v45 = vsel %vm929_vm7, %v927_v36, %v949_v51 }
 0x19f   : > { %v953_v16 = vsub.f32 %v867_v5, %v951_v45 }
 0x1a1   : > { %v955_v56 = vmul.f32 %v953_v16, %v953_v16 }
 0x1a3   : > { %v957_v48 = vsel %vm770_vm0, %v955_v56, 0.0 }
 0x1a4   : > { %v958_v25 = vadd.f32 %v957_v48, %v956_v15 }
 0x1a6   : > { %959 = vadd.xlane.f32.xlu0 %v958_v25 }
 0x203   : > { %v775_v17 = vpop.xlane.xlu0 %774 }
 0x204   : > { %v776_v23 = vrot.slane %v775_v17, 4 }
 0x206   : > { %v777_v24 = vadd.f32 %v776_v23, %v775_v17 }
 0x208   : > { %v778_v59 = vrot.slane %v777_v24, 2 }
 0x20a   : > { %v779_v26 = vadd.f32 %v778_v59, %v777_v24 }
 0x20c   : > { %v780_v4 = vrot.slane %v779_v26, 1 }
 0x20e   : > { %v781_v20 = vadd.f32 %v780_v4, %v779_v26 }
 0x210   : > { %1116 = vpush %v781_v20 }
 0x219   : > { %v960_v27 = vpop.xlane.xlu0 %959 }
 0x21a   : > { %v961_v35 = vrot.slane %v960_v27, 4 }
 0x21c   : > { %v962_v21 = vadd.f32 %v961_v35, %v960_v27 }
 0x21e   : > { %v963_v28 = vrot.slane %v962_v21, 2 }
 0x220   : > { %v964_v29 = vadd.f32 %v963_v28, %v962_v21 }
 0x222   : > { %v965_v30 = vrot.slane %v964_v29, 1 }
 0x224   : > { %v966_v32 = vadd.f32 %v965_v30, %v964_v29 }
 0x226   : > { %1118 = vpush %v966_v32 }
 0x241   : > { %s1117_s9 = spop %1116 }
 0x257   : > { %s1119_s16 = spop %1118 }
 0x258   : > { %s968_s10 = sadd.f32 %s1119_s16, %s1117_s9 }
 0x25a   : > { %v969_v33 = vstv %s968_s10 }
 0x25b   : > { %970 = vst [vmem:[%s243_s24] sm:$0x1] %v969_v33 }
 0x25c   : > { %1334 = shalt.err (!%p1331_p10)
}
 0x25d   : > { %1128 = dma.vmem_to_hbm [thread:$0]  (%p1471_p0), %s983_s6, 16, %s985_s30, %s972_s11  }
 0x25e PF: > { %s996_s8 = sand.u32 1, %s1369_s12   ;;  %p2552_p12 = scmp.ge.s32.totalorder %s1381_s15, 2 }
 0x25f   : > { %s997_s2 = scalar_lea.sflag [#allocation4], %s996_s8 }
 0x260   : > { %p1142_p5 = pnand %p2552_p12, %p1477_p6 }
 0x262   : > { %p1143_p11 = pneg %p1142_p5 }
 0x264   : > { %1364 = dma.done.wait (%p1143_p11), %s997_s2, 16  }
 0x265   : > { %1366 = vsyncadd (%p1143_p11), %s997_s2, 4294967280  ;;  %s2553_s20 = sld [smem:[#allocation13_spill]]  ;;  %p19_p2 = scmp.ge.s32.totalorder %s1447_s26, 4  }
 0x266   : > { %s2554_s12 = smov %s1373_s13  ;;  %s2555_s13 = smov %s1377_s14 }
 0x267   : > { %s2557_s15 = smov %s1447_s26  ;;  %21 = sbr.rel (!%p19_p2) target bundleno = 9 (0x9), region = 94 }
 0x26b   : > { %s2556_s14 = smov %s2553_s20 }
 0x26c   :  { %1002 = vsyncpa [#allocation3], 1 }
 0x26d   :  { %1004 = vsyncpa [#allocation3 + $0x1], 1 }
 0x26e   :  { %1005 = vsyncpa [#allocation6], 1 }
 0x26f   :  { %1007 = vsyncpa [#allocation6 + $0x1], 1 }
 0x270   :  { %1008 = vsyncpa [#allocation4], 1 }
 0x271   :  { %1010 = vsyncpa [#allocation4 + $0x1], 1 }

</bundles_post_ra>
